<compile_context>
chip_gen: v7x
topology: tpu7x:2x2x1
jax: 0.10.0
libtpu: 0.0.40
codegen_flags: <defaults>
</compile_context>

<pallas_src>
import jax
import jax.numpy as jnp
from jax.experimental import pallas as pl
from jax.experimental.pallas import tpu as pltpu


# ---------------- fused Pallas kernel ----------------

def _make_actor_kernel(offsets, b_tile, c_out, q_len):
    """offsets: static flat-spatial tap offsets (i*W + j); q_len: per-sample
    conv-output width (H*W rounded up to 128)."""

    def kernel(x_ref, wblk_ref, bc_ref, w1_ref, b1_ref, w2_ref, b2_ref,
               o_ref, a_scr):
        # x_ref: (b_tile*c_pad, hw_pad) f32, rows ordered (sample, channel)
        xb = x_ref[...].astype(jnp.bfloat16)

        # --- in-VMEM im2col over the flat per-sample spatial axis ------------
        # 9 lane-shifted slices (XLU rolls), stacked along the sublane axis.
        # Rows of col are ordered (tap, sample, channel); padded channels and
        # out-of-window columns hold real-but-unused finite values or zeros.
        col = jnp.concatenate([xb[:, off:off + q_len] for off in offsets],
                              axis=0)                       # (9*b_tile*c_pad, q_len)

        # --- conv for the whole batch tile: ONE block-diagonal MXU matmul ----
        # wblk rows are (out_channel, sample); only the matching sample's
        # columns are non-zero, so this computes all B_TILE conv outputs at once.
        conv = jnp.dot(wblk_ref[...], col,
                       preferred_element_type=jnp.float32)   # (c_out*b_tile, q_len)
        conv = jnp.maximum(conv + bc_ref[...], 0.0)          # bias + ReLU
        a = conv.reshape(c_out, b_tile, q_len).astype(jnp.bfloat16)  # hoisted cast

        # --- channel-major flatten: aligned dense stores into VMEM scratch ---
        # (wrap-around / padded columns get zero fc1 weight, contributing 0)
        for c in range(c_out):
            a_scr[:, c * q_len:(c + 1) * q_len] = a[c]       # (b_tile, q_len) slab

        # --- fc1: single big-K matmul (b_tile, c_out*q_len) @ (.., 128) ------
        h1 = jnp.dot(a_scr[...], w1_ref[...],
                     preferred_element_type=jnp.float32)
        h1 = jnp.maximum(h1 + b1_ref[...], 0.0)              # (b_tile, 128) f32

        # --- fc_logits (output padded to 128 lanes -> dense unmasked store) --
        logits = jnp.dot(h1.astype(jnp.bfloat16), w2_ref[...],
                         preferred_element_type=jnp.float32) + b2_ref[...]
        o_ref[...] = logits                                   # (b_tile, n_pad) f32

    return kernel


# ---------------- params (PyTorch-equivalent init + one-time kernel staging) ----------------

def init_params(key, c_in, h, w, n_actions):
    """Kaiming-normal weights (std = sqrt(2/fan_in)), zero biases — matches layer_init."""
    ho, wo = h - 2, w - 2
    conv_out_dim = 16 * ho * wo
    k1, k2, k3 = jax.random.split(key, 3)
    return {
        "w_conv": jax.random.normal(k1, (16, c_in, 3, 3), jnp.float32)
                  * jnp.sqrt(2.0 / (c_in * 9)),
        "b_conv": jnp.zeros((16,), jnp.float32),
        "w_fc1": jax.random.normal(k2, (128, conv_out_dim), jnp.float32)
                 * jnp.sqrt(2.0 / conv_out_dim),
        "b_fc1": jnp.zeros((128,), jnp.float32),
        "w_out": jax.random.normal(k3, (n_actions, 128), jnp.float32)
                 * jnp.sqrt(2.0 / 128.0),
        "b_out": jnp.zeros((n_actions,), jnp.float32),
    }


def prepare_params(params, h, w, b_tile=8):
    """One-time re-layout of PyTorch-style params into kernel-friendly form.

    b_tile=8 keeps the block-diagonal conv operand tiny (147 KB bf16) and makes
    the conv matmul's M dimension 16*b_tile = 128 (a full MXU sublane tile).
    """
    c_out, c_in, kh, kw = params["w_conv"].shape
    ho, wo = h - kh + 1, w - kw + 1
    hidden = params["w_fc1"].shape[0]
    n_actions = params["w_out"].shape[0]
    n_pad = ((max(n_actions, 1) + 127) // 128) * 128
    c_pad = ((max(c_in, 8) + 7) // 8) * 8                 # pad channels to sublane tile
    q_len = ((h * w + 127) // 128) * 128                  # per-sample conv width, lane-aligned
    max_off = (kh - 1) * w + (kw - 1)
    hw_pad = ((q_len + max_off + 127) // 128) * 128       # padded flat spatial axis
    n_taps = kh * kw

    # conv taps, channel-padded: (taps, c_out, c_pad)
    w_t = jnp.transpose(params["w_conv"], (2, 3, 0, 1)).reshape(n_taps, c_out, c_in)
    w_t = jnp.pad(w_t, ((0, 0), (0, 0), (0, c_pad - c_in)))
    # block-diagonal over the per-step batch tile:
    #   rows (out_channel, sample), cols (tap, sample', channel), nonzero iff sample==sample'
    eye = jnp.eye(b_tile, dtype=jnp.float32)
    w_blk = jnp.einsum("toc,bB->obtBc", w_t, eye)
    w_blk = w_blk.reshape(c_out * b_tile, n_taps * b_tile * c_pad).astype(jnp.bfloat16)

    # conv bias replicated per (out_channel, sample) row
    b_conv = jnp.repeat(params["b_conv"], b_tile).reshape(c_out * b_tile, 1).astype(jnp.float32)

    # fc1 weight with rows indexed c*q_len + y*W + x (zero outside the valid window)
    w1 = params["w_fc1"].T.reshape(c_out, ho, wo, hidden)
    w1 = jnp.pad(w1, ((0, 0), (0, h - ho), (0, w - wo), (0, 0)))
    w1 = w1.reshape(c_out, h * w, hidden)
    w1 = jnp.pad(w1, ((0, 0), (0, q_len - h * w), (0, 0)))
    w1 = w1.reshape(c_out * q_len, hidden).astype(jnp.bfloat16)
    b1 = params["b_fc1"].reshape(1, hidden).astype(jnp.float32)

    # fc_logits: pad output dim to a lane-dense multiple of 128
    w2 = jnp.zeros((hidden, n_pad), jnp.bfloat16).at[:, :n_actions].set(
        params["w_out"].T.astype(jnp.bfloat16))
    b2 = jnp.zeros((1, n_pad), jnp.float32).at[0, :n_actions].set(params["b_out"])

    offsets = tuple(i * w + j for i in range(kh) for j in range(kw))

    prep = {"w_blk": w_blk, "b_conv": b_conv, "w1": w1, "b1": b1, "w2": w2, "b2": b2}
    meta = {"h": h, "w": w, "kh": kh, "kw": kw, "c_in": c_in, "c_out": c_out,
            "c_pad": c_pad, "q_len": q_len, "hw_pad": hw_pad, "hidden": hidden,
            "n_actions": n_actions, "n_pad": n_pad, "b_tile": b_tile,
            "offsets": offsets, "n_taps": n_taps}
    return prep, meta


# ---------------- forward ----------------

def actor_forward(prep, meta, x):
    x = jnp.asarray(x, jnp.float32)
    if x.ndim == 3:
        x = x[None]
    B, C, H, W = x.shape
    assert (C, H, W) == (meta["c_in"], meta["h"], meta["w"])

    b_tile, c_pad = meta["b_tile"], meta["c_pad"]
    q_len, hw_pad = meta["q_len"], meta["hw_pad"]
    c_out, hidden, n_pad = meta["c_out"], meta["hidden"], meta["n_pad"]
    n_taps = meta["n_taps"]
    k_fc1 = c_out * q_len

    b_pad = ((B + b_tile - 1) // b_tile) * b_tile
    # stage x as (B_pad*c_pad, hw_pad): zero-pad batch, channels, flat spatial
    xf = x.reshape(B, C, H * W)
    xf = jnp.pad(xf, ((0, b_pad - B), (0, c_pad - C), (0, hw_pad - H * W)))
    xf = xf.reshape(b_pad * c_pad, hw_pad)

    kernel = _make_actor_kernel(meta["offsets"], b_tile, c_out, q_len)
    n_steps = b_pad // b_tile

    flops = n_steps * (2 * (c_out * b_tile) * (n_taps * b_tile * c_pad) * q_len
                       + 2 * b_tile * k_fc1 * hidden
                       + 2 * b_tile * hidden * n_pad)
    bytes_accessed = (xf.size * 4 + prep["w_blk"].size * 2 + prep["w1"].size * 2
                      + prep["w2"].size * 2
                      + (prep["b_conv"].size + prep["b1"].size + prep["b2"].size) * 4
                      + b_pad * n_pad * 4)

    out = pl.pallas_call(
        kernel,
        out_shape=jax.ShapeDtypeStruct((b_pad, n_pad), jnp.float32),
        grid_spec=pltpu.PrefetchScalarGridSpec(
            num_scalar_prefetch=0,
            grid=(n_steps,),
            in_specs=[
                pl.BlockSpec((b_tile * c_pad, hw_pad), lambda i: (i, 0)),        # x tile
                pl.BlockSpec((c_out * b_tile, n_taps * b_tile * c_pad),
                             lambda i: (0, 0)),                                  # conv taps (block-diag)
                pl.BlockSpec((c_out * b_tile, 1), lambda i: (0, 0)),             # conv bias
                pl.BlockSpec((k_fc1, hidden), lambda i: (0, 0)),                 # fc1 W
                pl.BlockSpec((1, hidden), lambda i: (0, 0)),                     # fc1 b
                pl.BlockSpec((hidden, n_pad), lambda i: (0, 0)),                 # fc_out W
                pl.BlockSpec((1, n_pad), lambda i: (0, 0)),                      # fc_out b
            ],
            out_specs=pl.BlockSpec((b_tile, n_pad), lambda i: (i, 0)),
            scratch_shapes=[pltpu.VMEM((b_tile, k_fc1), jnp.bfloat16)],
        ),
        compiler_params=pltpu.CompilerParams(
            dimension_semantics=("parallel",)),
        cost_estimate=pl.CostEstimate(flops=flops, transcendentals=0,
                                      bytes_accessed=bytes_accessed),
    )(xf, prep["w_blk"], prep["b_conv"], prep["w1"], prep["b1"],
      prep["w2"], prep["b2"])

    return out[:B, :meta["n_actions"]]


def actor_forward_ref(params, x):
    """Pure-JAX f32 reference of the same forward pass (for correctness check)."""
    x = jnp.asarray(x, jnp.float32)
    if x.ndim == 3:
        x = x[None]
    conv = jax.lax.conv_general_dilated(
        x, params["w_conv"], window_strides=(1, 1), padding="VALID",
        dimension_numbers=("NCHW", "OIHW", "NCHW"))
    conv = conv + params["b_conv"][None, :, None, None]
    h = jnp.maximum(conv.reshape(x.shape[0], -1), 0.0)
    h = jnp.maximum(h @ params["w_fc1"].T + params["b_fc1"], 0.0)
    return h @ params["w_out"].T + params["b_out"]


if __name__ == "__main__":
    key = jax.random.PRNGKey(0)
    k_param, k_x = jax.random.split(key)

    B, C, H, W = 2, 4, 16, 16
    N_ACTIONS = 6

    params = init_params(k_param, C, H, W, N_ACTIONS)
    prep, meta = prepare_params(params, H, W)
    x = jax.random.normal(k_x, (B, C, H, W), jnp.float32)

    logits = actor_forward(prep, meta, x)
    logits = jax.block_until_ready(logits)

    ref = actor_forward_ref(params, x)
    assert logits.shape == (B, N_ACTIONS)
    # conv/fc weights are bf16 in the kernel (f32 accumulation) -> loosened tolerance
    assert jnp.allclose(logits, ref, atol=1e-1, rtol=1e-1), "mismatch vs reference"

    print("KERNEL_OK")
</pallas_src>

<mosaic_0001>
module attributes {stable_mosaic.version = 11 : i64} {
  func.func @kernel(%arg0: i32, %arg1: memref<64x384xf32, #tpu.memory_space<vmem>>, %arg2: memref<128x576xbf16, #tpu.memory_space<vmem>>, %arg3: memref<128x1xf32, #tpu.memory_space<vmem>>, %arg4: memref<4096x128xbf16, #tpu.memory_space<vmem>>, %arg5: memref<1x128xf32, #tpu.memory_space<vmem>>, %arg6: memref<128x128xbf16, #tpu.memory_space<vmem>>, %arg7: memref<1x128xf32, #tpu.memory_space<vmem>>, %arg8: memref<8x128xf32, #tpu.memory_space<vmem>>, %arg9: memref<8x4096xbf16, #tpu.memory_space<vmem>>) attributes {dimension_semantics = [#tpu.dimension_semantics<parallel>], iteration_bounds = array<i64: 1>, scalar_prefetch = 0 : i64, scratch_operands = 1 : i64, tpu.core_type = #tpu.core_type<tc>, window_params = [{transform_indices = @transform_0, window_bounds = array<i64: 64, 384>}, {pipeline_mode = #tpu.pipeline_mode<synchronous>, transform_indices = @transform_1, window_bounds = array<i64: 128, 576>}, {pipeline_mode = #tpu.pipeline_mode<synchronous>, transform_indices = @transform_2, window_bounds = array<i64: 128, 1>}, {pipeline_mode = #tpu.pipeline_mode<synchronous>, transform_indices = @transform_3, window_bounds = array<i64: 4096, 128>}, {pipeline_mode = #tpu.pipeline_mode<synchronous>, transform_indices = @transform_4, window_bounds = array<i64: 1, 128>}, {pipeline_mode = #tpu.pipeline_mode<synchronous>, transform_indices = @transform_5, window_bounds = array<i64: 128, 128>}, {pipeline_mode = #tpu.pipeline_mode<synchronous>, transform_indices = @transform_6, window_bounds = array<i64: 1, 128>}, {transform_indices = @transform_7, window_bounds = array<i64: 8, 128>}]} {
    %c0 = arith.constant 0 : index
    %c0_0 = arith.constant 0 : index
    %0 = vector.load %arg1[%c0, %c0_0] : memref<64x384xf32, #tpu.memory_space<vmem>>, vector<64x384xf32>
    %1 = arith.truncf %0 : vector<64x384xf32> to vector<64x384xbf16>
    %2 = vector.extract_strided_slice %1 {offsets = [0, 0], sizes = [64, 256], strides = [1, 1]} : vector<64x384xbf16> to vector<64x256xbf16>
    %3 = vector.extract_strided_slice %1 {offsets = [0, 1], sizes = [64, 256], strides = [1, 1]} : vector<64x384xbf16> to vector<64x256xbf16>
    %4 = vector.extract_strided_slice %1 {offsets = [0, 2], sizes = [64, 256], strides = [1, 1]} : vector<64x384xbf16> to vector<64x256xbf16>
    %5 = vector.extract_strided_slice %1 {offsets = [0, 16], sizes = [64, 256], strides = [1, 1]} : vector<64x384xbf16> to vector<64x256xbf16>
    %6 = vector.extract_strided_slice %1 {offsets = [0, 17], sizes = [64, 256], strides = [1, 1]} : vector<64x384xbf16> to vector<64x256xbf16>
    %7 = vector.extract_strided_slice %1 {offsets = [0, 18], sizes = [64, 256], strides = [1, 1]} : vector<64x384xbf16> to vector<64x256xbf16>
    %8 = vector.extract_strided_slice %1 {offsets = [0, 32], sizes = [64, 256], strides = [1, 1]} : vector<64x384xbf16> to vector<64x256xbf16>
    %9 = vector.extract_strided_slice %1 {offsets = [0, 33], sizes = [64, 256], strides = [1, 1]} : vector<64x384xbf16> to vector<64x256xbf16>
    %10 = vector.extract_strided_slice %1 {offsets = [0, 34], sizes = [64, 256], strides = [1, 1]} : vector<64x384xbf16> to vector<64x256xbf16>
    %11 = tpu.concatenate %2, %3, %4, %5, %6, %7, %8, %9, %10 in 0 : vector<64x256xbf16>, vector<64x256xbf16>, vector<64x256xbf16>, vector<64x256xbf16>, vector<64x256xbf16>, vector<64x256xbf16>, vector<64x256xbf16>, vector<64x256xbf16>, vector<64x256xbf16> -> vector<576x256xbf16>
    %c0_1 = arith.constant 0 : index
    %c0_2 = arith.constant 0 : index
    %12 = vector.load %arg2[%c0_1, %c0_2] : memref<128x576xbf16, #tpu.memory_space<vmem>>, vector<128x576xbf16>
    %cst = arith.constant dense<0.000000e+00> : vector<128x256xf32>
    %13 = tpu.matmul %12, %11, %cst {dimension_numbers = #tpu.dot_dimension_numbers<[1], [0], [0], [1], [0, 0, 1, 1], [], []>} : vector<128x576xbf16>, vector<576x256xbf16>, vector<128x256xf32> -> vector<128x256xf32>
    %c0_3 = arith.constant 0 : index
    %c0_4 = arith.constant 0 : index
    %14 = vector.load %arg3[%c0_3, %c0_4] : memref<128x1xf32, #tpu.memory_space<vmem>>, vector<128x1xf32>
    %15 = vector.broadcast %14 : vector<128x1xf32> to vector<128x256xf32>
    %16 = arith.addf %13, %15 : vector<128x256xf32>
    %cst_5 = arith.constant 0.000000e+00 : f32
    %17 = vector.broadcast %cst_5 : f32 to vector<128x256xf32>
    %18 = arith.maximumf %16, %17 : vector<128x256xf32>
    %19 = vector.shape_cast %18 : vector<128x256xf32> to vector<16x8x256xf32>
    %20 = arith.truncf %19 : vector<16x8x256xf32> to vector<16x8x256xbf16>
    %21 = vector.extract_strided_slice %20 {offsets = [0, 0, 0], sizes = [1, 8, 256], strides = [1, 1, 1]} : vector<16x8x256xbf16> to vector<1x8x256xbf16>
    %22 = vector.shape_cast %21 : vector<1x8x256xbf16> to vector<8x256xbf16>
    %c0_6 = arith.constant 0 : index
    %c0_7 = arith.constant 0 : index
    %23 = vector.load %arg9[%c0_6, %c0_7] : memref<8x4096xbf16, #tpu.memory_space<vmem>>, vector<8x256xbf16>
    tpu.vector_store %arg9[%c0_6, %c0_7], %22 {strides = array<i32>} : memref<8x4096xbf16, #tpu.memory_space<vmem>>, vector<8x256xbf16>,
    %24 = vector.extract_strided_slice %20 {offsets = [1, 0, 0], sizes = [1, 8, 256], strides = [1, 1, 1]} : vector<16x8x256xbf16> to vector<1x8x256xbf16>
    %25 = vector.shape_cast %24 : vector<1x8x256xbf16> to vector<8x256xbf16>
    %c0_8 = arith.constant 0 : index
    %c256 = arith.constant 256 : index
    %26 = vector.load %arg9[%c0_8, %c256] : memref<8x4096xbf16, #tpu.memory_space<vmem>>, vector<8x256xbf16>
    tpu.vector_store %arg9[%c0_8, %c256], %25 {strides = array<i32>} : memref<8x4096xbf16, #tpu.memory_space<vmem>>, vector<8x256xbf16>,
    %27 = vector.extract_strided_slice %20 {offsets = [2, 0, 0], sizes = [1, 8, 256], strides = [1, 1, 1]} : vector<16x8x256xbf16> to vector<1x8x256xbf16>
    %28 = vector.shape_cast %27 : vector<1x8x256xbf16> to vector<8x256xbf16>
    %c0_9 = arith.constant 0 : index
    %c512 = arith.constant 512 : index
    %29 = vector.load %arg9[%c0_9, %c512] : memref<8x4096xbf16, #tpu.memory_space<vmem>>, vector<8x256xbf16>
    tpu.vector_store %arg9[%c0_9, %c512], %28 {strides = array<i32>} : memref<8x4096xbf16, #tpu.memory_space<vmem>>, vector<8x256xbf16>,
    %30 = vector.extract_strided_slice %20 {offsets = [3, 0, 0], sizes = [1, 8, 256], strides = [1, 1, 1]} : vector<16x8x256xbf16> to vector<1x8x256xbf16>
    %31 = vector.shape_cast %30 : vector<1x8x256xbf16> to vector<8x256xbf16>
    %c0_10 = arith.constant 0 : index
    %c768 = arith.constant 768 : index
    %32 = vector.load %arg9[%c0_10, %c768] : memref<8x4096xbf16, #tpu.memory_space<vmem>>, vector<8x256xbf16>
    tpu.vector_store %arg9[%c0_10, %c768], %31 {strides = array<i32>} : memref<8x4096xbf16, #tpu.memory_space<vmem>>, vector<8x256xbf16>,
    %33 = vector.extract_strided_slice %20 {offsets = [4, 0, 0], sizes = [1, 8, 256], strides = [1, 1, 1]} : vector<16x8x256xbf16> to vector<1x8x256xbf16>
    %34 = vector.shape_cast %33 : vector<1x8x256xbf16> to vector<8x256xbf16>
    %c0_11 = arith.constant 0 : index
    %c1024 = arith.constant 1024 : index
    %35 = vector.load %arg9[%c0_11, %c1024] : memref<8x4096xbf16, #tpu.memory_space<vmem>>, vector<8x256xbf16>
    tpu.vector_store %arg9[%c0_11, %c1024], %34 {strides = array<i32>} : memref<8x4096xbf16, #tpu.memory_space<vmem>>, vector<8x256xbf16>,
    %36 = vector.extract_strided_slice %20 {offsets = [5, 0, 0], sizes = [1, 8, 256], strides = [1, 1, 1]} : vector<16x8x256xbf16> to vector<1x8x256xbf16>
    %37 = vector.shape_cast %36 : vector<1x8x256xbf16> to vector<8x256xbf16>
    %c0_12 = arith.constant 0 : index
    %c1280 = arith.constant 1280 : index
    %38 = vector.load %arg9[%c0_12, %c1280] : memref<8x4096xbf16, #tpu.memory_space<vmem>>, vector<8x256xbf16>
    tpu.vector_store %arg9[%c0_12, %c1280], %37 {strides = array<i32>} : memref<8x4096xbf16, #tpu.memory_space<vmem>>, vector<8x256xbf16>,
    %39 = vector.extract_strided_slice %20 {offsets = [6, 0, 0], sizes = [1, 8, 256], strides = [1, 1, 1]} : vector<16x8x256xbf16> to vector<1x8x256xbf16>
    %40 = vector.shape_cast %39 : vector<1x8x256xbf16> to vector<8x256xbf16>
    %c0_13 = arith.constant 0 : index
    %c1536 = arith.constant 1536 : index
    %41 = vector.load %arg9[%c0_13, %c1536] : memref<8x4096xbf16, #tpu.memory_space<vmem>>, vector<8x256xbf16>
    tpu.vector_store %arg9[%c0_13, %c1536], %40 {strides = array<i32>} : memref<8x4096xbf16, #tpu.memory_space<vmem>>, vector<8x256xbf16>,
    %42 = vector.extract_strided_slice %20 {offsets = [7, 0, 0], sizes = [1, 8, 256], strides = [1, 1, 1]} : vector<16x8x256xbf16> to vector<1x8x256xbf16>
    %43 = vector.shape_cast %42 : vector<1x8x256xbf16> to vector<8x256xbf16>
    %c0_14 = arith.constant 0 : index
    %c1792 = arith.constant 1792 : index
    %44 = vector.load %arg9[%c0_14, %c1792] : memref<8x4096xbf16, #tpu.memory_space<vmem>>, vector<8x256xbf16>
    tpu.vector_store %arg9[%c0_14, %c1792], %43 {strides = array<i32>} : memref<8x4096xbf16, #tpu.memory_space<vmem>>, vector<8x256xbf16>,
    %45 = vector.extract_strided_slice %20 {offsets = [8, 0, 0], sizes = [1, 8, 256], strides = [1, 1, 1]} : vector<16x8x256xbf16> to vector<1x8x256xbf16>
    %46 = vector.shape_cast %45 : vector<1x8x256xbf16> to vector<8x256xbf16>
    %c0_15 = arith.constant 0 : index
    %c2048 = arith.constant 2048 : index
    %47 = vector.load %arg9[%c0_15, %c2048] : memref<8x4096xbf16, #tpu.memory_space<vmem>>, vector<8x256xbf16>
    tpu.vector_store %arg9[%c0_15, %c2048], %46 {strides = array<i32>} : memref<8x4096xbf16, #tpu.memory_space<vmem>>, vector<8x256xbf16>,
    %48 = vector.extract_strided_slice %20 {offsets = [9, 0, 0], sizes = [1, 8, 256], strides = [1, 1, 1]} : vector<16x8x256xbf16> to vector<1x8x256xbf16>
    %49 = vector.shape_cast %48 : vector<1x8x256xbf16> to vector<8x256xbf16>
    %c0_16 = arith.constant 0 : index
    %c2304 = arith.constant 2304 : index
    %50 = vector.load %arg9[%c0_16, %c2304] : memref<8x4096xbf16, #tpu.memory_space<vmem>>, vector<8x256xbf16>
    tpu.vector_store %arg9[%c0_16, %c2304], %49 {strides = array<i32>} : memref<8x4096xbf16, #tpu.memory_space<vmem>>, vector<8x256xbf16>,
    %51 = vector.extract_strided_slice %20 {offsets = [10, 0, 0], sizes = [1, 8, 256], strides = [1, 1, 1]} : vector<16x8x256xbf16> to vector<1x8x256xbf16>
    %52 = vector.shape_cast %51 : vector<1x8x256xbf16> to vector<8x256xbf16>
    %c0_17 = arith.constant 0 : index
    %c2560 = arith.constant 2560 : index
    %53 = vector.load %arg9[%c0_17, %c2560] : memref<8x4096xbf16, #tpu.memory_space<vmem>>, vector<8x256xbf16>
    tpu.vector_store %arg9[%c0_17, %c2560], %52 {strides = array<i32>} : memref<8x4096xbf16, #tpu.memory_space<vmem>>, vector<8x256xbf16>,
    %54 = vector.extract_strided_slice %20 {offsets = [11, 0, 0], sizes = [1, 8, 256], strides = [1, 1, 1]} : vector<16x8x256xbf16> to vector<1x8x256xbf16>
    %55 = vector.shape_cast %54 : vector<1x8x256xbf16> to vector<8x256xbf16>
    %c0_18 = arith.constant 0 : index
    %c2816 = arith.constant 2816 : index
    %56 = vector.load %arg9[%c0_18, %c2816] : memref<8x4096xbf16, #tpu.memory_space<vmem>>, vector<8x256xbf16>
    tpu.vector_store %arg9[%c0_18, %c2816], %55 {strides = array<i32>} : memref<8x4096xbf16, #tpu.memory_space<vmem>>, vector<8x256xbf16>,
    %57 = vector.extract_strided_slice %20 {offsets = [12, 0, 0], sizes = [1, 8, 256], strides = [1, 1, 1]} : vector<16x8x256xbf16> to vector<1x8x256xbf16>
    %58 = vector.shape_cast %57 : vector<1x8x256xbf16> to vector<8x256xbf16>
    %c0_19 = arith.constant 0 : index
    %c3072 = arith.constant 3072 : index
    %59 = vector.load %arg9[%c0_19, %c3072] : memref<8x4096xbf16, #tpu.memory_space<vmem>>, vector<8x256xbf16>
    tpu.vector_store %arg9[%c0_19, %c3072], %58 {strides = array<i32>} : memref<8x4096xbf16, #tpu.memory_space<vmem>>, vector<8x256xbf16>,
    %60 = vector.extract_strided_slice %20 {offsets = [13, 0, 0], sizes = [1, 8, 256], strides = [1, 1, 1]} : vector<16x8x256xbf16> to vector<1x8x256xbf16>
    %61 = vector.shape_cast %60 : vector<1x8x256xbf16> to vector<8x256xbf16>
    %c0_20 = arith.constant 0 : index
    %c3328 = arith.constant 3328 : index
    %62 = vector.load %arg9[%c0_20, %c3328] : memref<8x4096xbf16, #tpu.memory_space<vmem>>, vector<8x256xbf16>
    tpu.vector_store %arg9[%c0_20, %c3328], %61 {strides = array<i32>} : memref<8x4096xbf16, #tpu.memory_space<vmem>>, vector<8x256xbf16>,
    %63 = vector.extract_strided_slice %20 {offsets = [14, 0, 0], sizes = [1, 8, 256], strides = [1, 1, 1]} : vector<16x8x256xbf16> to vector<1x8x256xbf16>
    %64 = vector.shape_cast %63 : vector<1x8x256xbf16> to vector<8x256xbf16>
    %c0_21 = arith.constant 0 : index
    %c3584 = arith.constant 3584 : index
    %65 = vector.load %arg9[%c0_21, %c3584] : memref<8x4096xbf16, #tpu.memory_space<vmem>>, vector<8x256xbf16>
    tpu.vector_store %arg9[%c0_21, %c3584], %64 {strides = array<i32>} : memref<8x4096xbf16, #tpu.memory_space<vmem>>, vector<8x256xbf16>,
    %66 = vector.extract_strided_slice %20 {offsets = [15, 0, 0], sizes = [1, 8, 256], strides = [1, 1, 1]} : vector<16x8x256xbf16> to vector<1x8x256xbf16>
    %67 = vector.shape_cast %66 : vector<1x8x256xbf16> to vector<8x256xbf16>
    %c0_22 = arith.constant 0 : index
    %c3840 = arith.constant 3840 : index
    %68 = vector.load %arg9[%c0_22, %c3840] : memref<8x4096xbf16, #tpu.memory_space<vmem>>, vector<8x256xbf16>
    tpu.vector_store %arg9[%c0_22, %c3840], %67 {strides = array<i32>} : memref<8x4096xbf16, #tpu.memory_space<vmem>>, vector<8x256xbf16>,
    %c0_23 = arith.constant 0 : index
    %c0_24 = arith.constant 0 : index
    %69 = vector.load %arg9[%c0_23, %c0_24] : memref<8x4096xbf16, #tpu.memory_space<vmem>>, vector<8x4096xbf16>
    %c0_25 = arith.constant 0 : index
    %c0_26 = arith.constant 0 : index
    %70 = vector.load %arg4[%c0_25, %c0_26] : memref<4096x128xbf16, #tpu.memory_space<vmem>>, vector<4096x128xbf16>
    %cst_27 = arith.constant dense<0.000000e+00> : vector<8x128xf32>
    %71 = tpu.matmul %69, %70, %cst_27 {dimension_numbers = #tpu.dot_dimension_numbers<[1], [0], [0], [1], [0, 0, 1, 1], [], []>} : vector<8x4096xbf16>, vector<4096x128xbf16>, vector<8x128xf32> -> vector<8x128xf32>
    %c0_28 = arith.constant 0 : index
    %c0_29 = arith.constant 0 : index
    %72 = vector.load %arg5[%c0_28, %c0_29] : memref<1x128xf32, #tpu.memory_space<vmem>>, vector<1x128xf32>
    %73 = vector.broadcast %72 : vector<1x128xf32> to vector<8x128xf32>
    %74 = arith.addf %71, %73 : vector<8x128xf32>
    %cst_30 = arith.constant 0.000000e+00 : f32
    %75 = vector.broadcast %cst_30 : f32 to vector<8x128xf32>
    %76 = arith.maximumf %74, %75 : vector<8x128xf32>
    %77 = arith.truncf %76 : vector<8x128xf32> to vector<8x128xbf16>
    %c0_31 = arith.constant 0 : index
    %c0_32 = arith.constant 0 : index
    %78 = vector.load %arg6[%c0_31, %c0_32] : memref<128x128xbf16, #tpu.memory_space<vmem>>, vector<128x128xbf16>
    %cst_33 = arith.constant dense<0.000000e+00> : vector<8x128xf32>
    %79 = tpu.matmul %77, %78, %cst_33 {dimension_numbers = #tpu.dot_dimension_numbers<[1], [0], [0], [1], [0, 0, 1, 1], [], []>} : vector<8x128xbf16>, vector<128x128xbf16>, vector<8x128xf32> -> vector<8x128xf32>
    %c0_34 = arith.constant 0 : index
    %c0_35 = arith.constant 0 : index
    %80 = vector.load %arg7[%c0_34, %c0_35] : memref<1x128xf32, #tpu.memory_space<vmem>>, vector<1x128xf32>
    %81 = vector.broadcast %80 : vector<1x128xf32> to vector<8x128xf32>
    %82 = arith.addf %79, %81 : vector<8x128xf32>
    %c0_36 = arith.constant 0 : index
    %c0_37 = arith.constant 0 : index
    %83 = vector.load %arg8[%c0_36, %c0_37] : memref<8x128xf32, #tpu.memory_space<vmem>>, vector<8x128xf32>
    tpu.vector_store %arg8[%c0_36, %c0_37], %82 {strides = array<i32>} : memref<8x128xf32, #tpu.memory_space<vmem>>, vector<8x128xf32>,
    return
  }
  func.func @transform_0(%arg0: i32) -> (i32, i32) {
    %c0_i32 = arith.constant 0 : i32
    %c0_i32_0 = arith.constant 0 : i32
    return %arg0, %c0_i32 : i32, i32
  }
  func.func @transform_1(%arg0: i32) -> (i32, i32) {
    %c0_i32 = arith.constant 0 : i32
    %c0_i32_0 = arith.constant 0 : i32
    %c0_i32_1 = arith.constant 0 : i32
    return %c0_i32, %c0_i32_0 : i32, i32
  }
  func.func @transform_2(%arg0: i32) -> (i32, i32) {
    %c0_i32 = arith.constant 0 : i32
    %c0_i32_0 = arith.constant 0 : i32
    %c0_i32_1 = arith.constant 0 : i32
    return %c0_i32, %c0_i32_0 : i32, i32
  }
  func.func @transform_3(%arg0: i32) -> (i32, i32) {
    %c0_i32 = arith.constant 0 : i32
    %c0_i32_0 = arith.constant 0 : i32
    %c0_i32_1 = arith.constant 0 : i32
    return %c0_i32, %c0_i32_0 : i32, i32
  }
  func.func @transform_4(%arg0: i32) -> (i32, i32) {
    %c0_i32 = arith.constant 0 : i32
    %c0_i32_0 = arith.constant 0 : i32
    %c0_i32_1 = arith.constant 0 : i32
    return %c0_i32, %c0_i32_0 : i32, i32
  }
  func.func @transform_5(%arg0: i32) -> (i32, i32) {
    %c0_i32 = arith.constant 0 : i32
    %c0_i32_0 = arith.constant 0 : i32
    %c0_i32_1 = arith.constant 0 : i32
    return %c0_i32, %c0_i32_0 : i32, i32
  }
  func.func @transform_6(%arg0: i32) -> (i32, i32) {
    %c0_i32 = arith.constant 0 : i32
    %c0_i32_0 = arith.constant 0 : i32
    %c0_i32_1 = arith.constant 0 : i32
    return %c0_i32, %c0_i32_0 : i32, i32
  }
  func.func @transform_7(%arg0: i32) -> (i32, i32) {
    %c0_i32 = arith.constant 0 : i32
    %c0_i32_0 = arith.constant 0 : i32
    return %arg0, %c0_i32 : i32, i32
  }
}

</mosaic_0001>

<bundles_post_ra>
// kernel: tpu_custom_call.1
= control target key start
LH: loop header
LB: loop body
LE: loop exit
PB: predicated region body
PF: predicated region fallthrough
CT: control target
= control target key end

     0   :  { %12 = vsyncpa [#allocation4], 0  ;;  %s6249_s0 = inlined_call_operand.vmem [shape: f32[64,384], index: 0, kind: input, shape index: {}]   ;;  %s6250_s1 = inlined_call_operand.vmem [shape: bf16[128,576], index: 1, kind: input, shape index: {}]   ;;  %s6251_s2 = inlined_call_operand.vmem [shape: f32[128,1], index: 2, kind: input, shape index: {}]   ;;  %s6252_s3 = inlined_call_operand.hbm [shape: bf16[4096,128], index: 3, kind: input, shape index: {}]   ;;  %s6253_s4 = inlined_call_operand.vmem [shape: f32[1,128], index: 4, kind: input, shape index: {}]   ;;  %s6254_s5 = inlined_call_operand.vmem [shape: bf16[128,128], index: 5, kind: input, shape index: {}]   ;;  %s6255_s6 = inlined_call_operand.vmem [shape: f32[1,128], index: 6, kind: input, shape index: {}]   ;;  %s6256_s7 = inlined_call_operand.hbm [shape: f32[8,128], index: 7, kind: output, shape index: {}]  }
   0x1   :  { %13 = vsyncpa [#allocation5], 0  ;;  %s5526_s24 = smov [#allocation3]   ;;  %s5478_s28 = scalar_lea.hbm %s6252_s3, 32768 }
   0x2   :  { %s25_s25 = sshll.u32 %s5526_s24, 4  ;;  %p5479_p0 = scmp.ne.s32.totalorder %s6252_s3, %s5478_s28  ;;  %s26_s25 = int_to_ptr.vmem [resolvable:$true] %s25_s25 }
   0x3   :  { %p5482_p1 = scmp.lt.u32.totalorder %s5478_s28, %s6252_s3 }
   0x5   :  { %p5484_p2 = pnand %p5482_p1, %p5479_p0 }
   0x7   :  { %5487 = shalt.err (!%p5484_p2)
}
   0x8   :  { %s5488_s10 = scalar_lea.vmem %s26_s25, 32768  ;;  %p5493_p4 = scmp.lt.s32.totalorder %s26_s25, %s26_s25 }
   0x9   :  { %p5489_p3 = scmp.ne.s32.totalorder %s26_s25, %s5488_s10  ;;  %p5494_p5 = scmp.lt.s32.totalorder %s5488_s10, %s5488_s10 }
   0xb   :  { %p5495_p6 = por %p5494_p5, %p5493_p4 }
   0xd   :  { %p5496_p7 = pnand %p5495_p6, %p5489_p3 }
   0xf   :  { %5499 = shalt.err (!%p5496_p7)
}
  0x10   :  { %s5527_s11 = smov 64   ;;  %s5528_s12 = smov 4  }
  0x11   :  { %31 = dma.hbm_to_vmem [thread:$0]  %s6252_s3, 32768, %s26_s25, [#allocation4], %s5527_s11, %s5527_s11, %s5528_s12  }
  0x12   :  { %5522 = dma.done.wait [#allocation4], 32768  }
  0x13   :  { %5523 = vsyncadd [#allocation4], 4294934528  ;;  %v43_v0 = vld [vmem:[%s6249_s0 + $0x8] sm:$0xff]  ;;  %v46_v1 = vld [vmem:[%s6249_s0 + $0x20] sm:$0xff]  ;;  %s5529_s30 = smov 127   ;;  %s5532_s19 = smov 111  }
  0x14   :  { %v42_v2 = vld [vmem:[%s6249_s0] sm:$0xff]  ;;  %v5602_v3 = vpack.c.bf16 %v46_v1, %v43_v0  ;;  %v45_v4 = vld [vmem:[%s6249_s0 + $0x18] sm:$0xff]  ;;  %v44_v5 = vld [vmem:[%s6249_s0 + $0x10] sm:$0xff]  ;;  %s5533_s20 = smov 110   ;;  %vm114_vm0 = vcmask 1039360   ;;  %s5534_s21 = smov 96  }
  0x15   :  { %v47_v6 = vld [vmem:[%s6249_s0 + $0x28] sm:$0xff]  ;;  %v5613_v7 = vpack.c.bf16 %v45_v4, %v42_v2  ;;  %v49_v8 = vld [vmem:[%s6249_s0 + $0x38] sm:$0xff]  ;;  %v52_v9 = vld [vmem:[%s6249_s0 + $0x50] sm:$0xff]  ;;  %vm155_vm1 = vcmask 1031168   ;;  %s5535_s22 = smov 95   ;;  %vm196_vm2 = vcmask 916480  }
  0x16   :  { %92 = vrot.lane.b32.xlu0 %v5602_v3, %s5529_s30  ;;  %v5623_v10 = vpack.c.bf16 %v47_v6, %v44_v5  ;;  %v5625_v11 = vpack.c.bf16 %v52_v9, %v49_v8  ;;  %v50_v12 = vld [vmem:[%s6249_s0 + $0x40] sm:$0xff]  ;;  %v48_v13 = vld [vmem:[%s6249_s0 + $0x30] sm:$0xff]  ;;  %v51_v14 = vld [vmem:[%s6249_s0 + $0x48] sm:$0xff]  ;;  %787 = vmatprep.subr.bf16.mxu0 %v5602_v3  ;;  %s5536_s3 = smov 94   ;;  %vm237_vm3 = vcmask 908288   ;;  %vm278_vm4 = vcmask 900096  }
  0x17   :  { %90 = vrot.lane.b32.xlu1 %v5613_v7, %s5529_s30  ;;  %v53_v15 = vld [vmem:[%s6249_s0 + $0x58] sm:$0xff]  ;;  %v55_v16 = vld [vmem:[%s6249_s0 + $0x68] sm:$0xff]  ;;  %v58_v17 = vld [vmem:[%s6249_s0 + $0x80] sm:$0xff]  ;;  %788 = vmatpush1.bf16.msra.mxu0 %v5613_v7  ;;  %v5650_v18 = vpack.c.bf16 %v51_v14, %v48_v13  ;;  %vm319_vm5 = vcmask 785408   ;;  %vm360_vm6 = vcmask 777216   ;;  %vm401_vm7 = vcmask 769024  }
  0x18   :  { %789 = vmatprep.subr.bf16.mxu0 %v5625_v11  ;;  %v54_v19 = vld [vmem:[%s6249_s0 + $0x60] sm:$0xff]  ;;  %v5657_v20 = vpack.c.bf16 %v53_v15, %v50_v12  ;;  %v5659_v21 = vpack.c.bf16 %v58_v17, %v55_v16  ;;  %v56_v22 = vld [vmem:[%s6249_s0 + $0x70] sm:$0xff]  ;;  %v59_v23 = vld [vmem:[%s6249_s0 + $0x88] sm:$0xff]  ;;  %vm762_vm8 = vcmask 523264   ;;  %vm5539_vm9 = vmmov 0   ;;  %s5540_s23 = smov [#allocation6]  }
  0x19   :  { %v57_v24 = vld [vmem:[%s6249_s0 + $0x78] sm:$0xff]  ;;  %v64_v26 = vld [vmem:[%s6249_s0 + $0xb0] sm:$0xff]  ;;  %v63_v28 = vld [vmem:[%s6249_s0 + $0xa8] sm:$0xff]  ;;  %v5694_v31 = vpack.c.bf16 %v59_v23, %v56_v22  ;;  %s4245_s24 = sshll.u32 %s5540_s23, 4  ;;  %s4246_s24 = int_to_ptr.vmem [resolvable:$true] %s4245_s24 }
  0x1a   :  { %94 = vrot.lane.b32.xlu0 %v5623_v10, %s5529_s30  ;;  %v61_v25 = vld [vmem:[%s6249_s0 + $0x98] sm:$0xff]  ;;  %v60_v27 = vld [vmem:[%s6249_s0 + $0x90] sm:$0xff]  ;;  %v5686_v29 = vpack.c.bf16 %v57_v24, %v54_v19  ;;  %v62_v32 = vld [vmem:[%s6249_s0 + $0xa0] sm:$0xff]  ;;  %s5500_s25 = scalar_lea.vmem %s4246_s24, 128  ;;  %p5505_p9 = scmp.lt.s32.totalorder %s4246_s24, %s4246_s24 }
  0x1b   :  { %98 = vrot.lane.b32.xlu1 %v5625_v11, %s5529_s30  ;;  %790 = vmatpush1.bf16.msra.mxu0 %v5650_v18  ;;  %v5690_v30 = vpack.c.bf16 %v64_v26, %v61_v25  ;;  %v65_v33 = vld [vmem:[%s6249_s0 + $0xb8] sm:$0xff]  ;;  %v5704_v34 = vpack.c.bf16 %v63_v28, %v60_v27  ;;  %s5530_s0 = smov 126   ;;  %p5501_p8 = scmp.ne.s32.totalorder %s4246_s24, %s5500_s25 }
  0x1c   :  { %791 = vmatprep.subr.bf16.mxu0 %v5659_v21  ;;  %v5713_v35 = vpack.c.bf16 %v65_v33, %v62_v32  ;;  %v5160_v36 = vld [vmem:[%s6250_s1 + $0x4] ss:$20 sps:$4 sm:$0xff]   ;;  %p5506_p10 = scmp.lt.s32.totalorder %s5500_s25, %s5500_s25 }
  0x1d   :  { %819 = vmatprep.mubr.bf16.mxu0 %v5160_v36 }
  0x1e   :  { %100 = vrot.lane.b32.xlu0 %v5657_v20, %s5529_s30  ;;  %p5507_p11 = por %p5506_p10, %p5505_p9 }
  0x1f   :  { %96 = vrot.lane.b32.xlu1 %v5650_v18, %s5529_s30  ;;  %792 = vmatpush1.bf16.msra.mxu0 %v5686_v29 }
  0x20   :  { %793 = vmatprep.subr.bf16.mxu0 %v5690_v30  ;;  %p5508_p12 = pnand %p5507_p11, %p5501_p8 }
  0x22   :  { %104 = vrot.lane.b32.xlu0 %v5659_v21, %s5529_s30 }
  0x23   :  { %106 = vrot.lane.b32.xlu1 %v5694_v31, %s5529_s30  ;;  %794 = vmatpush1.bf16.msra.mxu0 %v5704_v34 }
  0x26   :  { %102 = vrot.lane.b32.xlu0 %v5686_v29, %s5529_s30 }
  0x27   :  { %110 = vrot.lane.b32.xlu1 %v5690_v30, %s5529_s30 }
  0x2a   :  { %112 = vrot.lane.b32.xlu0 %v5713_v35, %s5529_s30 }
  0x2b   :  { %108 = vrot.lane.b32.xlu1 %v5704_v34, %s5529_s30  ;;  %s5531_s30 = smov 112  }
  0x2e   :  { %133 = vrot.lane.b32.xlu0 %v5602_v3, %s5530_s0 }
  0x2f   :  { %135 = vrot.lane.b32.xlu1 %v5623_v10, %s5530_s0 }
  0x32   :  { %131 = vrot.lane.b32.xlu0 %v5613_v7, %s5530_s0 }
  0x33   :  { %139 = vrot.lane.b32.xlu1 %v5625_v11, %s5530_s0 }
  0x36   :  { %141 = vrot.lane.b32.xlu0 %v5657_v20, %s5530_s0 }
  0x37   :  { %137 = vrot.lane.b32.xlu1 %v5650_v18, %s5530_s0 }
  0x3a   :  { %145 = vrot.lane.b32.xlu0 %v5659_v21, %s5530_s0 }
  0x3b   :  { %147 = vrot.lane.b32.xlu1 %v5694_v31, %s5530_s0 }
  0x3e   :  { %143 = vrot.lane.b32.xlu0 %v5686_v29, %s5530_s0 }
  0x3f   :  { %151 = vrot.lane.b32.xlu1 %v5690_v30, %s5530_s0 }
  0x42   :  { %153 = vrot.lane.b32.xlu0 %v5713_v35, %s5530_s0 }
  0x43   :  { %149 = vrot.lane.b32.xlu1 %v5704_v34, %s5530_s0 }
  0x46   :  { %174 = vrot.lane.b32.xlu0 %v5602_v3, %s5531_s30 }
  0x47   :  { %176 = vrot.lane.b32.xlu1 %v5623_v10, %s5531_s30 }
  0x4a   :  { %172 = vrot.lane.b32.xlu0 %v5613_v7, %s5531_s30 }
  0x4b   :  { %180 = vrot.lane.b32.xlu1 %v5625_v11, %s5531_s30 }
  0x4e   :  { %182 = vrot.lane.b32.xlu0 %v5657_v20, %s5531_s30 }
  0x4f   :  { %178 = vrot.lane.b32.xlu1 %v5650_v18, %s5531_s30 }
  0x52   :  { %186 = vrot.lane.b32.xlu0 %v5659_v21, %s5531_s30 }
  0x53   :  { %188 = vrot.lane.b32.xlu1 %v5694_v31, %s5531_s30 }
  0x56   :  { %184 = vrot.lane.b32.xlu0 %v5686_v29, %s5531_s30 }
  0x57   :  { %192 = vrot.lane.b32.xlu1 %v5690_v30, %s5531_s30 }
  0x5a   :  { %194 = vrot.lane.b32.xlu0 %v5713_v35, %s5531_s30 }
  0x5b   :  { %190 = vrot.lane.b32.xlu1 %v5704_v34, %s5531_s30 }
  0x5e   :  { %215 = vrot.lane.b32.xlu0 %v5602_v3, %s5532_s19 }
  0x5f   :  { %217 = vrot.lane.b32.xlu1 %v5623_v10, %s5532_s19 }
  0x62   :  { %213 = vrot.lane.b32.xlu0 %v5613_v7, %s5532_s19 }
  0x63   :  { %221 = vrot.lane.b32.xlu1 %v5625_v11, %s5532_s19 }
  0x66   :  { %223 = vrot.lane.b32.xlu0 %v5657_v20, %s5532_s19 }
  0x67   :  { %219 = vrot.lane.b32.xlu1 %v5650_v18, %s5532_s19 }
  0x6a   :  { %227 = vrot.lane.b32.xlu0 %v5659_v21, %s5532_s19 }
  0x6b   :  { %229 = vrot.lane.b32.xlu1 %v5694_v31, %s5532_s19 }
  0x6e   :  { %225 = vrot.lane.b32.xlu0 %v5686_v29, %s5532_s19 }
  0x6f   :  { %233 = vrot.lane.b32.xlu1 %v5690_v30, %s5532_s19 }
  0x72   :  { %235 = vrot.lane.b32.xlu0 %v5713_v35, %s5532_s19 }
  0x73   :  { %231 = vrot.lane.b32.xlu1 %v5704_v34, %s5532_s19 }
  0x76   :  { %256 = vrot.lane.b32.xlu0 %v5602_v3, %s5533_s20 }
  0x77   :  { %258 = vrot.lane.b32.xlu1 %v5623_v10, %s5533_s20 }
  0x7a   :  { %254 = vrot.lane.b32.xlu0 %v5613_v7, %s5533_s20 }
  0x7b   :  { %262 = vrot.lane.b32.xlu1 %v5625_v11, %s5533_s20 }
  0x7e   :  { %264 = vrot.lane.b32.xlu0 %v5657_v20, %s5533_s20 }
  0x7f   :  { %260 = vrot.lane.b32.xlu1 %v5650_v18, %s5533_s20 }
  0x82   :  { %268 = vrot.lane.b32.xlu0 %v5659_v21, %s5533_s20 }
  0x83   :  { %270 = vrot.lane.b32.xlu1 %v5694_v31, %s5533_s20 }
  0x86   :  { %266 = vrot.lane.b32.xlu0 %v5686_v29, %s5533_s20 }
  0x87   :  { %274 = vrot.lane.b32.xlu1 %v5690_v30, %s5533_s20 }
  0x88   :  { %v93_v37 = vpop.permute.xlu0 %92 }
  0x89   :  { %v91_v38 = vpop.permute.xlu1 %90 }
  0x8a   :  { %276 = vrot.lane.b32.xlu0 %v5713_v35, %s5533_s20  ;;  %v115_v42 = vsel %vm114_vm0, %v91_v38, %v93_v37 }
  0x8b   :  { %272 = vrot.lane.b32.xlu1 %v5704_v34, %s5533_s20 }
  0x8c   :  { %v95_v39 = vpop.permute.xlu0 %94 }
  0x8d   :  { %v99_v40 = vpop.permute.xlu1 %98  ;;  %v116_v41 = vsel %vm114_vm0, %v93_v37, %v95_v39 }
  0x8e   :  { %297 = vrot.lane.b32.xlu0 %v5602_v3, %s5534_s21  ;;  %795 = vmatprep.subr.bf16.mxu0 %v116_v41 }
  0x8f   :  { %299 = vrot.lane.b32.xlu1 %v5623_v10, %s5534_s21  ;;  %796 = vmatpush1.bf16.msra.mxu0 %v115_v42  ;;  %v5163_v42 = vld [vmem:[%s6250_s1 + $0x28] ss:$20 sps:$4 sm:$0xff]  }
  0x90   :  { %v101_v43 = vpop.permute.xlu0 %100 }
  0x91   :  { %v97_v44 = vpop.permute.xlu1 %96  ;;  %v118_v45 = vsel %vm114_vm0, %v99_v40, %v101_v43 }
  0x92   :  { %295 = vrot.lane.b32.xlu0 %v5613_v7, %s5534_s21  ;;  %797 = vmatprep.subr.bf16.mxu0 %v118_v45  ;;  %v117_v46 = vsel %vm114_vm0, %v97_v44, %v99_v40  ;;  %v5164_v44 = vld [vmem:[%s6250_s1 + $0x54] ss:$20 sps:$4 sm:$0xff]  }
  0x93   :  { %303 = vrot.lane.b32.xlu1 %v5625_v11, %s5534_s21  ;;  %798 = vmatpush1.bf16.msra.mxu0 %v117_v46 }
  0x94   :  { %v105_v47 = vpop.permute.xlu0 %104 }
  0x95   :  { %v107_v48 = vpop.permute.xlu1 %106 }
  0x96   :  { %305 = vrot.lane.b32.xlu0 %v5657_v20, %s5534_s21  ;;  %v120_v49 = vsel %vm114_vm0, %v105_v47, %v107_v48 }
  0x97   :  { %301 = vrot.lane.b32.xlu1 %v5650_v18, %s5534_s21  ;;  %799 = vmatprep.subr.bf16.mxu0 %v120_v49  ;;  %v5166_v49 = vld [vmem:[%s6250_s1 + $0x50] ss:$20 sps:$4 sm:$0xff]  }
  0x98   :  { %v103_v50 = vpop.permute.xlu0 %102 }
  0x99   :  { %v111_v51 = vpop.permute.xlu1 %110  ;;  %v119_v52 = vsel %vm114_vm0, %v103_v50, %v105_v47 }
  0x9a   :  { %309 = vrot.lane.b32.xlu0 %v5659_v21, %s5534_s21  ;;  %800 = vmatpush1.bf16.msra.mxu0 %v119_v52 }
  0x9b   :  { %311 = vrot.lane.b32.xlu1 %v5694_v31, %s5534_s21 }
  0x9c   :  { %v113_v53 = vpop.permute.xlu0 %112 }
  0x9d   :  { %v109_v54 = vpop.permute.xlu1 %108  ;;  %v122_v55 = vsel %vm114_vm0, %v111_v51, %v113_v53 }
  0x9e   :  { %307 = vrot.lane.b32.xlu0 %v5686_v29, %s5534_s21  ;;  %801 = vmatprep.subr.bf16.mxu0 %v122_v55  ;;  %v121_v56 = vsel %vm114_vm0, %v109_v54, %v111_v51  ;;  %v5167_v51 = vld [vmem:[%s6250_s1 + $0x7c] ss:$20 sps:$4 sm:$0xff]  }
  0x9f   :  { %315 = vrot.lane.b32.xlu1 %v5690_v30, %s5534_s21  ;;  %802 = vmatpush1.bf16.msra.mxu0 %v121_v56 }
  0xa0   :  { %v134_v57 = vpop.permute.xlu0 %133 }
  0xa1   :  { %v136_v58 = vpop.permute.xlu1 %135 }
  0xa2   :  { %317 = vrot.lane.b32.xlu0 %v5713_v35, %s5534_s21  ;;  %v157_v59 = vsel %vm155_vm1, %v134_v57, %v136_v58  ;;  %v5169_v58 = vld [vmem:[%s6250_s1 + $0x78] ss:$20 sps:$4 sm:$0xff]  }
  0xa3   :  { %313 = vrot.lane.b32.xlu1 %v5704_v34, %s5534_s21  ;;  %803 = vmatprep.subr.bf16.mxu0 %v157_v59 }
  0xa4   :  { %v132_v60 = vpop.permute.xlu0 %131 }
  0xa5   :  { %v140_v61 = vpop.permute.xlu1 %139  ;;  %v156_v62 = vsel %vm155_vm1, %v132_v60, %v134_v57 }
  0xa6   :  { %338 = vrot.lane.b32.xlu0 %v5602_v3, %s5535_s22  ;;  %804 = vmatpush1.bf16.msra.mxu0 %v156_v62 }
  0xa7   :  { %340 = vrot.lane.b32.xlu1 %v5623_v10, %s5535_s22 }
  0xa8   :  { %v142_v63 = vpop.permute.xlu0 %141 }
  0xa9   :  { %v138_v0 = vpop.permute.xlu1 %137  ;;  %v159_v1 = vsel %vm155_vm1, %v140_v61, %v142_v63 }
  0xaa   :  { %336 = vrot.lane.b32.xlu0 %v5613_v7, %s5535_s22  ;;  %805 = vmatprep.subr.bf16.mxu0 %v159_v1  ;;  %v158_v2 = vsel %vm155_vm1, %v138_v0, %v140_v61  ;;  %v5170_v61 = vld [vmem:[%s6250_s1 + $0xa4] ss:$20 sps:$4 sm:$0xff]   ;;  %v5537_v1 = vmov 0  }
  0xab   :  { %344 = vrot.lane.b32.xlu1 %v5625_v11, %s5535_s22  ;;  %806 = vmatpush1.bf16.msra.mxu0 %v158_v2 }
  0xac   :  { %v146_v4 = vpop.permute.xlu0 %145  ;;  %5156 = vset.pattern.permute.xlu0 %v5537_v1  ;;  %5157 = vset.pattern.permute.xlu1 %v5537_v1 }
  0xad   :  { %v148_v5 = vpop.permute.xlu1 %147 }
  0xae   :  { %346 = vrot.lane.b32.xlu0 %v5657_v20, %s5535_s22  ;;  %v161_v6 = vsel %vm155_vm1, %v146_v4, %v148_v5 }
  0xaf   :  { %342 = vrot.lane.b32.xlu1 %v5650_v18, %s5535_s22  ;;  %807 = vmatprep.subr.bf16.mxu0 %v161_v6  ;;  %v5172_v6 = vld [vmem:[%s6250_s1 + $0xa0] ss:$20 sps:$4 sm:$0xff]  }
  0xb0   :  { %v144_v8 = vpop.permute.xlu0 %143 }
  0xb1   :  { %v152_v9 = vpop.permute.xlu1 %151  ;;  %v160_v12 = vsel %vm155_vm1, %v144_v8, %v146_v4 }
  0xb2   :  { %350 = vrot.lane.b32.xlu0 %v5659_v21, %s5535_s22  ;;  %808 = vmatpush1.bf16.msra.mxu0 %v160_v12  ;;  %v5173_v12 = vld [vmem:[%s6250_s1 + $0xcc] ss:$20 sps:$4 sm:$0xff]  }
  0xb3   :  { %352 = vrot.lane.b32.xlu1 %v5694_v31, %s5535_s22 }
  0xb4   :  { %v154_v13 = vpop.permute.xlu0 %153 }
  0xb5   :  { %v150_v14 = vpop.permute.xlu1 %149  ;;  %v163_v15 = vsel %vm155_vm1, %v152_v9, %v154_v13 }
  0xb6   :  { %348 = vrot.lane.b32.xlu0 %v5686_v29, %s5535_s22  ;;  %809 = vmatprep.subr.bf16.mxu0 %v163_v15  ;;  %v162_v16 = vsel %vm155_vm1, %v150_v14, %v152_v9 }
  0xb7   :  { %356 = vrot.lane.b32.xlu1 %v5690_v30, %s5535_s22  ;;  %810 = vmatpush1.bf16.msra.mxu0 %v162_v16 }
  0xb8   :  { %v175_v17 = vpop.permute.xlu0 %174 }
  0xb9   :  { %v177_v19 = vpop.permute.xlu1 %176 }
  0xba   :  { %358 = vrot.lane.b32.xlu0 %v5713_v35, %s5535_s22  ;;  %v198_v22 = vsel %vm196_vm2, %v175_v17, %v177_v19  ;;  %v5175_v19 = vld [vmem:[%s6250_s1 + $0xc8] ss:$20 sps:$4 sm:$0xff]  }
  0xbb   :  { %354 = vrot.lane.b32.xlu1 %v5704_v34, %s5535_s22  ;;  %811 = vmatprep.subr.bf16.mxu0 %v198_v22 }
  0xbc   :  { %v173_v23 = vpop.permute.xlu0 %172 }
  0xbd   :  { %v181_v24 = vpop.permute.xlu1 %180  ;;  %v197_v25 = vsel %vm196_vm2, %v173_v23, %v175_v17 }
  0xbe   :  { %379 = vrot.lane.b32.xlu0 %v5602_v3, %s5536_s3  ;;  %812 = vmatpush1.bf16.msra.mxu0 %v197_v25 }
  0xbf   :  { %381 = vrot.lane.b32.xlu1 %v5623_v10, %s5536_s3 }
  0xc0   :  { %v183_v26 = vpop.permute.xlu0 %182 }
  0xc1   :  { %v179_v27 = vpop.permute.xlu1 %178  ;;  %v200_v28 = vsel %vm196_vm2, %v181_v24, %v183_v26 }
  0xc2   :  { %377 = vrot.lane.b32.xlu0 %v5613_v7, %s5536_s3  ;;  %813 = vmatprep.subr.bf16.mxu0 %v200_v28  ;;  %v199_v32 = vsel %vm196_vm2, %v179_v27, %v181_v24  ;;  %v5176_v24 = vld [vmem:[%s6250_s1 + $0xf4] ss:$20 sps:$4 sm:$0xff]  }
  0xc3   :  { %814 = vmatpush1.bf16.msra.mxu0 %v199_v32  ;;  %385 = vrot.lane.b32.xlu1 %v5625_v11, %s5536_s3 }
  0xc4   :  { %v187_v33 = vpop.permute.xlu0 %186 }
  0xc5   :  { %v189_v3 = vpop.permute.xlu1 %188 }
  0xc6   :  { %v202_v36 = vsel %vm196_vm2, %v187_v33, %v189_v3  ;;  %387 = vrot.lane.b32.xlu0 %v5657_v20, %s5536_s3  ;;  %v5158_v20 = vld [vmem:[%s6250_s1] ss:$20 sps:$4 sm:$0xff]  }
  0xc7   :  { %815 = vmatprep.subr.bf16.mxu0 %v202_v36  ;;  %383 = vrot.lane.b32.xlu1 %v5650_v18, %s5536_s3  ;;  %v5179_v36 = vld [vmem:[%s6250_s1 + $0x11c] ss:$20 sps:$4 sm:$0xff]  }
  0xc8   :  { %v185_v10 = vpop.permute.xlu0 %184 }
  0xc9   :  { %v193_v7 = vpop.permute.xlu1 %192  ;;  %v201_v37 = vsel %vm196_vm2, %v185_v10, %v187_v33  ;;  %v5178_v33 = vld [vmem:[%s6250_s1 + $0xf0] ss:$20 sps:$4 sm:$0xff]  }
  0xca   :  { %816 = vmatpush1.bf16.msra.mxu0 %v201_v37  ;;  %391 = vrot.lane.b32.xlu0 %v5659_v21, %s5536_s3  ;;  %v5161_v21 = vld [vmem:[%s6250_s1 + $0x2c] ss:$20 sps:$4 sm:$0xff]  }
  0xcb   :  { %393 = vrot.lane.b32.xlu1 %v5694_v31, %s5536_s3 }
  0xcc   :  { %v195_v11 = vpop.permute.xlu0 %194 }
  0xcd   :  { %v191_v38 = vpop.permute.xlu1 %190  ;;  %v204_v18 = vsel %vm196_vm2, %v193_v7, %v195_v11 }
  0xce   :  { %817 = vmatprep.subr.bf16.mxu0 %v204_v18  ;;  %v203_v39 = vsel %vm196_vm2, %v191_v38, %v193_v7  ;;  %389 = vrot.lane.b32.xlu0 %v5686_v29, %s5536_s3  ;;  %v5181_v38 = vld [vmem:[%s6250_s1 + $0x118] ss:$20 sps:$4 sm:$0xff]  }
  0xcf   :  { %818 = vmatpush1.bf16.msra.mxu0 %v203_v39  ;;  %397 = vrot.lane.b32.xlu1 %v5690_v30, %s5536_s3 }
  0xd0   :  { %v216_v31 = vpop.permute.xlu0 %215 }
  0xd1   :  { %v218_v40 = vpop.permute.xlu1 %217 }
  0xd2   :  { %v239_v41 = vsel %vm237_vm3, %v216_v31, %v218_v40  ;;  %820 = vmatmul.mubr.bf16.vlgmr.msra.gmra.mrb[0].mxu0 %v5158_v20  ;;  %399 = vrot.lane.b32.xlu0 %v5713_v35, %s5536_s3 }
  0xd3   :  { %900 = vmatprep.subr.bf16.mxu0 %v239_v41  ;;  %395 = vrot.lane.b32.xlu1 %v5704_v34, %s5536_s3 }
  0xd4   :  { %v214_v29 = vpop.permute.xlu0 %213  ;;  %829 = vmatprep.mubr.bf16.mxu0 %v5161_v21  ;;  %v5184_v21 = vld [vmem:[%s6250_s1 + $0xc] ss:$20 sps:$4 sm:$0xff]  }
  0xd5   :  { %v238_v30 = vsel %vm237_vm3, %v214_v29, %v216_v31  ;;  %v222_v43 = vpop.permute.xlu1 %221 }
  0xd6   :  { %901 = vmatpush1.bf16.msra.mxu0 %v238_v30 }
  0xd8   :  { %v224_v45 = vpop.permute.xlu0 %223 }
  0xd9   :  { %v220_v35 = vpop.permute.xlu1 %219  ;;  %v241_v46 = vsel %vm237_vm3, %v222_v43, %v224_v45 }
  0xda   :  { %v240_v34 = vsel %vm237_vm3, %v220_v35, %v222_v43  ;;  %902 = vmatprep.subr.bf16.mxu0 %v241_v46  ;;  %830 = vmatmul.mubr.bf16.gmra.mrb[4].mxu0 %v5163_v42 }
  0xdb   :  { %903 = vmatpush1.bf16.msra.mxu0 %v240_v34  ;;  %839 = vmatprep.mubr.bf16.mxu0 %v5164_v44 }
  0xdc   :  { %v228_v47 = vpop.permute.xlu0 %227 }
  0xdd   :  { %v230_v48 = vpop.permute.xlu1 %229 }
  0xde   :  { %v243_v50 = vsel %vm237_vm3, %v228_v47, %v230_v48 }
  0xdf   :  { %904 = vmatprep.subr.bf16.mxu0 %v243_v50 }
  0xe0   :  { %v226_v52 = vpop.permute.xlu0 %225 }
  0xe1   :  { %v242_v53 = vsel %vm237_vm3, %v226_v52, %v228_v47  ;;  %v234_v54 = vpop.permute.xlu1 %233 }
  0xe2   :  { %905 = vmatpush1.bf16.msra.mxu0 %v242_v53 }
  0xe3   :  { %840 = vmatmul.mubr.bf16.gmra.mrb[8].mxu0 %v5166_v49 }
  0xe4   :  { %v236_v55 = vpop.permute.xlu0 %235  ;;  %849 = vmatprep.mubr.bf16.mxu0 %v5167_v51 }
  0xe5   :  { %v232_v56 = vpop.permute.xlu1 %231  ;;  %v245_v57 = vsel %vm237_vm3, %v234_v54, %v236_v55 }
  0xe6   :  { %v244_v59 = vsel %vm237_vm3, %v232_v56, %v234_v54  ;;  %906 = vmatprep.subr.bf16.mxu0 %v245_v57 }
  0xe7   :  { %907 = vmatpush1.bf16.msra.mxu0 %v244_v59 }
  0xe8   :  { %v257_v60 = vpop.permute.xlu0 %256 }
  0xe9   :  { %v259_v62 = vpop.permute.xlu1 %258 }
  0xea   :  { %v280_v63 = vsel %vm278_vm4, %v257_v60, %v259_v62  ;;  %v466_v62 = vld [vmem:[%s6251_s2] sm:$0xff] }
  0xeb   :  { %908 = vmatprep.subr.bf16.mxu0 %v280_v63  ;;  %850 = vmatmul.mubr.bf16.gmra.mrb[12].mxu0 %v5169_v58 }
  0xec   :  { %v255_v0 = vpop.permute.xlu0 %254  ;;  %859 = vmatprep.mubr.bf16.mxu0 %v5170_v61  ;;  %484 = vperm.xlu0 %5156, %v466_v62   ;;  %v5200_v62 = vld [vmem:[%s6250_s1 + $0xfc] ss:$20 sps:$4 sm:$0xff]  }
  0xed   :  { %v279_v2 = vsel %vm278_vm4, %v255_v0, %v257_v60  ;;  %v263_v4 = vpop.permute.xlu1 %262  ;;  %v469_v0 = vld [vmem:[%s6251_s2 + $0x18] sm:$0xff] }
  0xee   :  { %909 = vmatpush1.bf16.msra.mxu0 %v279_v2  ;;  %v467_v2 = vld [vmem:[%s6251_s2 + $0x8] sm:$0xff] }
  0xef   :  { %489 = vperm.xlu1 %5157, %v467_v2   ;;  %v5205_v2 = vld [vmem:[%s6250_s1 + $0x120] ss:$20 sps:$4 sm:$0xff]  }
  0xf0   :  { %v265_v5 = vpop.permute.xlu0 %264  ;;  %499 = vperm.xlu0 %5156, %v469_v0   ;;  %v5203_v0 = vld [vmem:[%s6250_s1 + $0x124] ss:$20 sps:$4 sm:$0xff]  }
  0xf1   :  { %v261_v8 = vpop.permute.xlu1 %260  ;;  %v282_v9 = vsel %vm278_vm4, %v263_v4, %v265_v5 }
  0xf2   :  { %v281_v13 = vsel %vm278_vm4, %v261_v8, %v263_v4  ;;  %910 = vmatprep.subr.bf16.mxu0 %v282_v9  ;;  %v5182_v8 = vld [vmem:[%s6250_s1 + $0x8] ss:$20 sps:$4 sm:$0xff]   ;;  %v468_v9 = vld [vmem:[%s6251_s2 + $0x10] sm:$0xff] }
  0xf3   :  { %911 = vmatpush1.bf16.msra.mxu0 %v281_v13  ;;  %v5214_v13 = vld [vmem:[#allocation3 + $0x40] sm:$0xff]   ;;  %494 = vperm.xlu1 %5157, %v468_v9  }
  0xf4   :  { %v269_v14 = vpop.permute.xlu0 %268  ;;  %860 = vmatmul.mubr.bf16.gmra.mrb[16].mxu0 %v5172_v6  ;;  %4664 = vmatprep.subr.bf16.mxu1 %v5214_v13  ;;  %v5210_v9 = vld [vmem:[%s6250_s1 + $0xb0] ss:$20 sps:$4 sm:$0xff]   ;;  %v5212_v13 = vld [vmem:[%s6250_s1 + $0x100] ss:$20 sps:$4 sm:$0xff]  }
  0xf5   :  { %v271_v15 = vpop.permute.xlu1 %270  ;;  %869 = vmatprep.mubr.bf16.mxu0 %v5173_v12  ;;  %v5185_v12 = vld [vmem:[%s6250_s1 + $0x34] ss:$20 sps:$4 sm:$0xff]  }
  0xf6   :  { %v284_v16 = vsel %vm278_vm4, %v269_v14, %v271_v15 }
  0xf7   :  { %912 = vmatprep.subr.bf16.mxu0 %v284_v16  ;;  %v5216_v16 = vld [vmem:[#allocation3 + $0x48] sm:$0xff]  }
  0xf8   :  { %v267_v17 = vpop.permute.xlu0 %266 }
  0xf9   :  { %v283_v22 = vsel %vm278_vm4, %v267_v17, %v269_v14  ;;  %v275_v23 = vpop.permute.xlu1 %274  ;;  %v5215_v14 = vld [vmem:[#allocation3] sm:$0xff]  }
  0xfa   :  { %913 = vmatpush1.bf16.msra.mxu0 %v283_v22  ;;  %4665 = vmatpush3.bf16.msra.mxu1 %v5215_v14  ;;  %v5213_v14 = vld [vmem:[%s6250_s1 + $0x128] ss:$20 sps:$4 sm:$0xff]  }
  0xfb   :  { %4666 = vmatprep.subr.bf16.mxu1 %v5216_v16  ;;  %v5227_v16 = vld [vmem:[#allocation3 + $0x30] sm:$0xff]  }
  0xfc   :  { %v277_v25 = vpop.permute.xlu0 %276  ;;  %870 = vmatmul.mubr.bf16.gmra.mrb[20].mxu0 %v5175_v19  ;;  %v471_v19 = vld [vmem:[%s6251_s2 + $0x28] sm:$0xff] }
  0xfd   :  { %v273_v26 = vpop.permute.xlu1 %272  ;;  %v286_v27 = vsel %vm278_vm4, %v275_v23, %v277_v25  ;;  %879 = vmatprep.mubr.bf16.mxu0 %v5176_v24  ;;  %v5217_v24 = vld [vmem:[#allocation3 + $0x8] sm:$0xff]   ;;  %v5218_v25 = vld [vmem:[#allocation3 + $0x50] sm:$0xff]   ;;  %509 = vperm.xlu0 %5156, %v471_v19   ;;  %v5229_v19 = vld [vmem:[#allocation3 + $0x380] sm:$0xff]  }
  0xfe   :  { %v285_v28 = vsel %vm278_vm4, %v273_v26, %v275_v23  ;;  %914 = vmatprep.subr.bf16.mxu0 %v286_v27  ;;  %v470_v23 = vld [vmem:[%s6251_s2 + $0x20] sm:$0xff]  ;;  %4667 = vmatpush3.bf16.msra.mxu1 %v5217_v24  ;;  %v5232_v24 = vld [vmem:[#allocation3 + $0x3c8] sm:$0xff]  }
  0xff   :  { %915 = vmatpush1.bf16.msra.mxu0 %v285_v28  ;;  %504 = vperm.xlu1 %5157, %v470_v23   ;;  %v5231_v23 = vld [vmem:[#allocation3 + $0x38] sm:$0xff]  }
 0x100   :  { %v298_v32 = vpop.permute.xlu0 %297  ;;  %4668 = vmatprep.subr.bf16.mxu1 %v5218_v25  ;;  %v5234_v25 = vld [vmem:[#allocation3 + $0xc0] sm:$0xff]  }
 0x101   :  { %v300_v3 = vpop.permute.xlu1 %299 }
 0x102   :  { %v321_v10 = vsel %vm319_vm5, %v298_v32, %v300_v3  ;;  %v472_v3 = vld [vmem:[%s6251_s2 + $0x30] sm:$0xff] }
 0x103   :  { %916 = vmatprep.subr.bf16.mxu0 %v321_v10  ;;  %514 = vperm.xlu1 %5157, %v472_v3   ;;  %v5245_v3 = vld [vmem:[#allocation3 + $0x3a0] sm:$0xff]  }
 0x104   :  { %v296_v7 = vpop.permute.xlu0 %295  ;;  %880 = vmatmul.mubr.bf16.gmra.mrb[24].mxu0 %v5178_v33  ;;  %v5187_v33 = vld [vmem:[%s6250_s1 + $0x30] ss:$20 sps:$4 sm:$0xff]  }
 0x105   :  { %v320_v37 = vsel %vm319_vm5, %v296_v7, %v298_v32  ;;  %v304_v11 = vpop.permute.xlu1 %303  ;;  %889 = vmatprep.mubr.bf16.mxu0 %v5179_v36  ;;  %v473_v32 = vld [vmem:[%s6251_s2 + $0x38] sm:$0xff]  ;;  %v5219_v7 = vld [vmem:[#allocation3 + $0x10] sm:$0xff]  }
 0x106   :  { %917 = vmatpush1.bf16.msra.mxu0 %v320_v37  ;;  %v5188_v36 = vld [vmem:[%s6250_s1 + $0x5c] ss:$20 sps:$4 sm:$0xff]   ;;  %519 = vperm.xlu0 %5156, %v473_v32  }
 0x107   :  { %4669 = vmatpush3.bf16.msra.mxu1 %v5219_v7  ;;  %v5241_v32 = vld [vmem:[#allocation3 + $0x398] sm:$0xff]   ;;  %v5252_v7 = vld [vmem:[#allocation3 + $0x3f0] sm:$0xff]  }
 0x108   :  { %v306_v20 = vpop.permute.xlu0 %305 }
 0x109   :  { %v302_v18 = vpop.permute.xlu1 %301  ;;  %v323_v39 = vsel %vm319_vm5, %v304_v11, %v306_v20  ;;  %v475_v20 = vld [vmem:[%s6251_s2 + $0x48] sm:$0xff] }
 0x10a   :  { %v322_v31 = vsel %vm319_vm5, %v302_v18, %v304_v11  ;;  %918 = vmatprep.subr.bf16.mxu0 %v323_v39  ;;  %v474_v39 = vld [vmem:[%s6251_s2 + $0x40] sm:$0xff]  ;;  %529 = vperm.xlu0 %5156, %v475_v20   ;;  %v5257_v20 = vld [vmem:[#allocation3 + $0x3b8] sm:$0xff]  }
 0x10b   :  { %919 = vmatpush1.bf16.msra.mxu0 %v322_v31  ;;  %v5221_v31 = vld [vmem:[#allocation3 + $0x18] sm:$0xff]   ;;  %524 = vperm.xlu1 %5157, %v474_v39  }
 0x10c   :  { %v310_v40 = vpop.permute.xlu0 %309  ;;  %890 = vmatmul.mubr.bf16.gmra.mrb[28].mxu0 %v5181_v38  ;;  %v5220_v38 = vld [vmem:[#allocation3 + $0x58] sm:$0xff]  }
 0x10d   :  { %v312_v41 = vpop.permute.xlu1 %311  ;;  %932 = vmatprep.mubr.bf16.mxu0 %v5184_v21  ;;  %4670 = vmatprep.subr.bf16.mxu1 %v5220_v38  ;;  %v5260_v38 = vld [vmem:[#allocation3 + $0x4c0] sm:$0xff]  }
 0x10e   :  { %v325_v29 = vsel %vm319_vm5, %v310_v40, %v312_v41  ;;  %v477_v41 = vld [vmem:[%s6251_s2 + $0x58] sm:$0xff]  ;;  %4671 = vmatpush3.bf16.msra.mxu1 %v5221_v31 }
 0x10f   :  { %920 = vmatprep.subr.bf16.mxu0 %v325_v29  ;;  %v5222_v29 = vld [vmem:[#allocation3 + $0x60] sm:$0xff]   ;;  %539 = vperm.xlu0 %5156, %v477_v41  }
 0x110   :  { %v308_v42 = vpop.permute.xlu0 %307  ;;  %4672 = vmatprep.subr.bf16.mxu1 %v5222_v29 }
 0x111   :  { %v324_v30 = vsel %vm319_vm5, %v308_v42, %v310_v40  ;;  %v316_v43 = vpop.permute.xlu1 %315  ;;  %v5190_v42 = vld [vmem:[%s6250_s1 + $0x58] ss:$20 sps:$4 sm:$0xff]  }
 0x112   :  { %921 = vmatpush1.bf16.msra.mxu0 %v324_v30 }
 0x114   :  { %v318_v44 = vpop.permute.xlu0 %317 }
 0x115   :  { %v314_v45 = vpop.permute.xlu1 %313  ;;  %v327_v35 = vsel %vm319_vm5, %v316_v43, %v318_v44  ;;  %v5191_v44 = vld [vmem:[%s6250_s1 + $0x84] ss:$20 sps:$4 sm:$0xff]  }
 0x116   :  { %v326_v46 = vsel %vm319_vm5, %v314_v45, %v316_v43  ;;  %922 = vmatprep.subr.bf16.mxu0 %v327_v35  ;;  %v476_v43 = vld [vmem:[%s6251_s2 + $0x50] sm:$0xff]  ;;  %v5223_v35 = vld [vmem:[#allocation3 + $0x20] sm:$0xff]  }
 0x117   :  { %923 = vmatpush1.bf16.msra.mxu0 %v326_v46  ;;  %534 = vperm.xlu1 %5157, %v476_v43  }
 0x118   :  { %v339_v34 = vpop.permute.xlu0 %338  ;;  %4673 = vmatpush3.bf16.msra.mxu1 %v5223_v35 }
 0x119   :  { %v341_v47 = vpop.permute.xlu1 %340 }
 0x11a   :  { %v362_v48 = vsel %vm360_vm6, %v339_v34, %v341_v47  ;;  %v479_v47 = vld [vmem:[%s6251_s2 + $0x68] sm:$0xff] }
 0x11b   :  { %924 = vmatprep.subr.bf16.mxu0 %v362_v48  ;;  %v5224_v48 = vld [vmem:[#allocation3 + $0x68] sm:$0xff]   ;;  %549 = vperm.xlu0 %5156, %v479_v47  }
 0x11c   :  { %v337_v49 = vpop.permute.xlu0 %336  ;;  %4674 = vmatprep.subr.bf16.mxu1 %v5224_v48  ;;  %v5238_v47 = vld [vmem:[#allocation3 + $0xc8] sm:$0xff]  }
 0x11d   :  { %v361_v50 = vsel %vm360_vm6, %v337_v49, %v339_v34  ;;  %v345_v51 = vpop.permute.xlu1 %344  ;;  %v478_v49 = vld [vmem:[%s6251_s2 + $0x60] sm:$0xff] }
 0x11e   :  { %925 = vmatpush1.bf16.msra.mxu0 %v361_v50  ;;  %544 = vperm.xlu1 %5157, %v478_v49  }
 0x120   :  { %v347_v52 = vpop.permute.xlu0 %346 }
 0x121   :  { %v343_v53 = vpop.permute.xlu1 %342  ;;  %v364_v54 = vsel %vm360_vm6, %v345_v51, %v347_v52 }
 0x122   :  { %v363_v55 = vsel %vm360_vm6, %v343_v53, %v345_v51  ;;  %926 = vmatprep.subr.bf16.mxu0 %v364_v54  ;;  %v5225_v51 = vld [vmem:[#allocation3 + $0x28] sm:$0xff]   ;;  %v481_v54 = vld [vmem:[%s6251_s2 + $0x78] sm:$0xff] }
 0x123   :  { %927 = vmatpush1.bf16.msra.mxu0 %v363_v55  ;;  %v5193_v55 = vld [vmem:[%s6250_s1 + $0x80] ss:$20 sps:$4 sm:$0xff]   ;;  %559 = vperm.xlu0 %5156, %v481_v54  }
 0x124   :  { %v351_v56 = vpop.permute.xlu0 %350  ;;  %4675 = vmatpush3.bf16.msra.mxu1 %v5225_v51  ;;  %v5242_v54 = vld [vmem:[#allocation3 + $0xd0] sm:$0xff]  }
 0x125   :  { %v353_v57 = vpop.permute.xlu1 %352 }
 0x126   :  { %v366_v58 = vsel %vm360_vm6, %v351_v56, %v353_v57  ;;  %v480_v57 = vld [vmem:[%s6251_s2 + $0x70] sm:$0xff] }
 0x127   :  { %928 = vmatprep.subr.bf16.mxu0 %v366_v58  ;;  %v5194_v58 = vld [vmem:[%s6250_s1 + $0xac] ss:$20 sps:$4 sm:$0xff]   ;;  %554 = vperm.xlu1 %5157, %v480_v57   ;;  %v5246_v57 = vld [vmem:[#allocation3 + $0xd8] sm:$0xff]  }
 0x128   :  { %v349_v59 = vpop.permute.xlu0 %348 }
 0x129   :  { %v365_v60 = vsel %vm360_vm6, %v349_v59, %v351_v56  ;;  %v357_v61 = vpop.permute.xlu1 %356  ;;  %v5196_v59 = vld [vmem:[%s6250_s1 + $0xa8] ss:$20 sps:$4 sm:$0xff]  }
 0x12a   :  { %929 = vmatpush1.bf16.msra.mxu0 %v365_v60  ;;  %v5197_v60 = vld [vmem:[%s6250_s1 + $0xd4] ss:$20 sps:$4 sm:$0xff]  }
 0x12c   :  { %v359_v63 = vpop.permute.xlu0 %358 }
 0x12d   :  { %v355_v4 = vpop.permute.xlu1 %354  ;;  %v368_v5 = vsel %vm360_vm6, %v357_v61, %v359_v63  ;;  %v5202_v63 = vld [vmem:[%s6250_s1 + $0xf8] ss:$20 sps:$4 sm:$0xff]  }
 0x12e   :  { %v367_v6 = vsel %vm360_vm6, %v355_v4, %v357_v61  ;;  %930 = vmatprep.subr.bf16.mxu0 %v368_v5  ;;  %v5199_v61 = vld [vmem:[%s6250_s1 + $0xd0] ss:$20 sps:$4 sm:$0xff]   ;;  %v5207_v5 = vld [vmem:[%s6250_s1 + $0x38] ss:$20 sps:$4 sm:$0xff]  }
 0x12f   :  { %931 = vmatpush1.bf16.msra.mxu0 %v367_v6  ;;  %v5206_v4 = vld [vmem:[%s6250_s1 + $0x10] ss:$20 sps:$4 sm:$0xff]   ;;  %v5208_v6 = vld [vmem:[%s6250_s1 + $0x60] ss:$20 sps:$4 sm:$0xff]  }
 0x130   :  { %v380_v15 = vpop.permute.xlu0 %379 }
 0x131   :  { %v382_v17 = vpop.permute.xlu1 %381 }
 0x132   :  { %933 = vmatmul.mubr.bf16.vlgmr.msra.gmra.mrb[0].mxu0 %v5182_v8  ;;  %v403_v22 = vsel %vm401_vm7, %v380_v15, %v382_v17  ;;  %v5209_v8 = vld [vmem:[%s6250_s1 + $0x88] ss:$20 sps:$4 sm:$0xff]   ;;  %v5228_v17 = vld [vmem:[#allocation3 + $0x3c0] sm:$0xff]  }
 0x133   :  { %1013 = vmatprep.subr.bf16.mxu0 %v403_v22  ;;  %942 = vmatprep.mubr.bf16.mxu0 %v5185_v12  ;;  %v5211_v12 = vld [vmem:[%s6250_s1 + $0xd8] ss:$20 sps:$4 sm:$0xff]  }
 0x134   :  { %v378_v26 = vpop.permute.xlu0 %377  ;;  %v5230_v22 = vld [vmem:[#allocation3 + $0x78] sm:$0xff]  }
 0x135   :  { %v402_v27 = vsel %vm401_vm7, %v378_v26, %v380_v15  ;;  %v386_v28 = vpop.permute.xlu1 %385  ;;  %v5226_v15 = vld [vmem:[#allocation3 + $0x70] sm:$0xff]  }
 0x136   :  { %1014 = vmatpush1.bf16.msra.mxu0 %v402_v27  ;;  %4676 = vmatprep.subr.bf16.mxu1 %v5226_v15  ;;  %v5236_v26 = vld [vmem:[#allocation3 + $0x3d0] sm:$0xff]  }
 0x137   :  { %4677 = vmatpush3.bf16.msra.mxu1 %v5227_v16  ;;  %v5237_v27 = vld [vmem:[#allocation3 + $0x390] sm:$0xff]  }
 0x138   :  { %v388_v10 = vpop.permute.xlu0 %387  ;;  %4678 = vmatprep.subr.bf16.mxu1 %v5230_v22  ;;  %v5258_v15 = vld [vmem:[#allocation3 + $0xf0] sm:$0xff]  }
 0x139   :  { %v384_v37 = vpop.permute.xlu1 %383  ;;  %v405_v11 = vsel %vm401_vm7, %v386_v28, %v388_v10  ;;  %v5249_v10 = vld [vmem:[#allocation3 + $0x3a8] sm:$0xff]  }
 0x13a   :  { %943 = vmatmul.mubr.bf16.gmra.mrb[4].mxu0 %v5187_v33  ;;  %v404_v18 = vsel %vm401_vm7, %v384_v37, %v386_v28  ;;  %1015 = vmatprep.subr.bf16.mxu0 %v405_v11  ;;  %v5240_v28 = vld [vmem:[#allocation3 + $0x3d8] sm:$0xff]   ;;  %v5244_v33 = vld [vmem:[#allocation3 + $0x3e0] sm:$0xff]   ;;  %v5253_v37 = vld [vmem:[#allocation3 + $0x3b0] sm:$0xff]  }
 0x13b   :  { %952 = vmatprep.mubr.bf16.mxu0 %v5188_v36  ;;  %1016 = vmatpush1.bf16.msra.mxu0 %v404_v18  ;;  %v5248_v36 = vld [vmem:[#allocation3 + $0x3e8] sm:$0xff]   ;;  %v5256_v11 = vld [vmem:[#allocation3 + $0x3f8] sm:$0xff]  }
 0x13c   :  { %v392_v21 = vpop.permute.xlu0 %391  ;;  %4679 = vmatpush3.bf16.msra.mxu1 %v5231_v23  ;;  %v5259_v23 = vld [vmem:[#allocation3 + $0xb0] sm:$0xff]  }
 0x13d   :  { %v394_v40 = vpop.permute.xlu1 %393  ;;  %4686 = vmatprep.subr.bf16.mxu1 %v5234_v25 }
 0x13e   :  { %v407_v30 = vsel %vm401_vm7, %v392_v21, %v394_v40 }
 0x13f   :  { %1017 = vmatprep.subr.bf16.mxu0 %v407_v30 }
 0x140   :  { %v390_v45 = vpop.permute.xlu0 %389 }
 0x141   :  { %v406_v46 = vsel %vm401_vm7, %v390_v45, %v392_v21  ;;  %v398_v34 = vpop.permute.xlu1 %397 }
 0x142   :  { %953 = vmatmul.mubr.bf16.gmra.mrb[8].mxu0 %v5190_v42 }
 0x143   :  { %962 = vmatprep.mubr.bf16.mxu0 %v5191_v44  ;;  %1018 = vmatpush1.bf16.msra.mxu0 %v406_v46  ;;  %v5235_v46 = vld [vmem:[#allocation3 + $0x80] sm:$0xff]  }
 0x144   :  { %v400_v50 = vpop.permute.xlu0 %399 }
 0x145   :  { %v396_v52 = vpop.permute.xlu1 %395  ;;  %v409_v53 = vsel %vm401_vm7, %v398_v34, %v400_v50 }
 0x146   :  { %v408_v56 = vsel %vm401_vm7, %v396_v52, %v398_v34  ;;  %1019 = vmatprep.subr.bf16.mxu0 %v409_v53  ;;  %v5239_v52 = vld [vmem:[#allocation3 + $0x88] sm:$0xff]  }
 0x147   :  { %1020 = vmatpush1.bf16.msra.mxu0 %v408_v56  ;;  %v5243_v56 = vld [vmem:[#allocation3 + $0x90] sm:$0xff]  }
 0x148   :  { %4818 = vmatprep.subr.bf16.mxu0 %v5228_v17 }
 0x14a   :  { %963 = vmatmul.mubr.bf16.gmra.mrb[12].mxu0 %v5193_v55 }
 0x14b   :  { %972 = vmatprep.mubr.bf16.mxu0 %v5194_v58 }
 0x152   :  { %973 = vmatmul.mubr.bf16.gmra.mrb[16].mxu0 %v5196_v59 }
 0x153   :  { %982 = vmatprep.mubr.bf16.mxu0 %v5197_v60 }
 0x15a   :  { %983 = vmatmul.mubr.bf16.gmra.mrb[20].mxu0 %v5199_v61  ;;  %v5247_v61 = vld [vmem:[#allocation3 + $0x98] sm:$0xff]  }
 0x15b   :  { %992 = vmatprep.mubr.bf16.mxu0 %v5200_v62 }
 0x162   :  { %993 = vmatmul.mubr.bf16.gmra.mrb[24].mxu0 %v5202_v63  ;;  %v5250_v63 = vld [vmem:[#allocation3 + $0xe0] sm:$0xff]  }
 0x163   :  { %1002 = vmatprep.mubr.bf16.mxu0 %v5203_v0 }
 0x16a   :  { %1003 = vmatmul.mubr.bf16.gmra.mrb[28].mxu0 %v5205_v2  ;;  %v5251_v2 = vld [vmem:[#allocation3 + $0xa0] sm:$0xff]  }
 0x16b   :  { %1045 = vmatprep.mubr.bf16.mxu0 %v5537_v1  ;;  %v485_v18 = vpop.permute.xlu0 %484 }
 0x16e   :  { %v490_v40 = vpop.permute.xlu1 %489 }
 0x16f   :  { %v6097_v55 = vpop.permute.xlu0 %499 }
 0x172   :  { %4294 = vmatmul.mubr.msk.bf16.vlgmr.msra.gmra.mrb[0].mxu0 %vm762_vm8, %v5206_v4  ;;  %v5254_v4 = vld [vmem:[#allocation3 + $0xe8] sm:$0xff]   ;;  %v6113_v17 = vpop.permute.xlu1 %494 }
 0x173   :  { %1055 = vmatprep.mubr.bf16.mxu0 %v5537_v1  ;;  %4819 = vmatpush3.bf16.msra.mxu0 %v5229_v19 }
 0x174   :  { %4820 = vmatprep.subr.bf16.mxu0 %v5232_v24 }
 0x17a   :  { %4295 = vmatmul.mubr.msk.bf16.gmra.mrb[4].mxu0 %vm762_vm8, %v5207_v5 }
 0x17b   :  { %1065 = vmatprep.mubr.bf16.mxu0 %v5537_v1 }
 0x17c   :  { %v6107_v0 = vpop.permute.xlu0 %509 }
 0x182   :  { %4296 = vmatmul.mubr.msk.bf16.gmra.mrb[8].mxu0 %vm762_vm8, %v5208_v6 }
 0x183   :  { %1075 = vmatprep.mubr.bf16.mxu0 %v5537_v1 }
 0x18a   :  { %4297 = vmatmul.mubr.msk.bf16.gmra.mrb[12].mxu0 %vm762_vm8, %v5209_v8  ;;  %v520_v8 = vpop.permute.xlu0 %519 }
 0x18b   :  { %1085 = vmatprep.mubr.bf16.mxu0 %v5537_v1 }
 0x192   :  { %4298 = vmatmul.mubr.msk.bf16.gmra.mrb[16].mxu0 %vm762_vm8, %v5210_v9 }
 0x193   :  { %1095 = vmatprep.mubr.bf16.mxu0 %v5537_v1 }
 0x19a   :  { %4299 = vmatmul.mubr.msk.bf16.gmra.mrb[20].mxu0 %vm762_vm8, %v5211_v12  ;;  %v5255_v12 = vld [vmem:[#allocation3 + $0xa8] sm:$0xff]  }
 0x19b   :  { %1105 = vmatprep.mubr.bf16.mxu0 %v5537_v1 }
 0x1a2   :  { %4300 = vmatmul.mubr.msk.bf16.gmra.mrb[24].mxu0 %vm762_vm8, %v5212_v13 }
 0x1a3   :  { %1115 = vmatprep.mubr.bf16.mxu0 %v5537_v1  ;;  %v5233_v1 = vld [vmem:[#allocation3 + $0x388] sm:$0xff]  }
 0x1a4   :  { %4821 = vmatpush3.bf16.msra.mxu0 %v5233_v1  ;;  %v5262_v1 = vld [vmem:[#allocation3 + $0xf8] sm:$0xff]  }
 0x1a5   :  { %4822 = vmatprep.subr.bf16.mxu0 %v5236_v26 }
 0x1a8   :  { %4823 = vmatpush3.bf16.msra.mxu0 %v5237_v27 }
 0x1a9   :  { %4824 = vmatprep.subr.bf16.mxu0 %v5240_v28  ;;  %v5261_v28 = vld [vmem:[#allocation3 + $0x480] sm:$0xff]  }
 0x1aa   :  { %4301 = vmatmul.mubr.msk.bf16.gmra.mrb[28].mxu0 %vm762_vm8, %v5213_v14 }
 0x1ac   :  { %4825 = vmatpush3.bf16.msra.mxu0 %v5241_v32 }
 0x1ad   :  { %4826 = vmatprep.subr.bf16.mxu0 %v5244_v33 }
 0x1b0   :  { %4827 = vmatpush3.bf16.msra.mxu0 %v5245_v3  ;;  %v5264_v3 = vld [vmem:[#allocation3 + $0x4c8] sm:$0xff]  }
 0x1b1   :  { %4828 = vmatprep.subr.bf16.mxu0 %v5248_v36 }
 0x1b4   :  { %4829 = vmatpush3.bf16.msra.mxu0 %v5249_v10  ;;  %v5263_v10 = vld [vmem:[#allocation3 + $0xb8] sm:$0xff]  }
 0x1b5   :  { %4830 = vmatprep.subr.bf16.mxu0 %v5252_v7  ;;  %v6122_v7 = vpop.permute.xlu0 %529 }
 0x1b8   :  { %4831 = vmatpush3.bf16.msra.mxu0 %v5253_v37 }
 0x1b9   :  { %4832 = vmatprep.subr.bf16.mxu0 %v5256_v11 }
 0x1bc   :  { %4833 = vmatpush3.bf16.msra.mxu0 %v5257_v20  ;;  %v5266_v20 = vld [vmem:[#allocation3 + $0x140] sm:$0xff]  }
 0x1bd   :  { %4862 = vmatprep.subr.bf16.mxu0 %v5260_v38 }
 0x245   :  { %v1047_v39 = vpop.f32.mrb[0].mxu0 }
 0x246   :  { %v5045_v21 = vadd.f32 %v1047_v39, %v485_v18  ;;  %v1049_v31 = vpop.f32.mrb[1].mxu0  ;;  %v5265_v39 = vld [vmem:[#allocation3 + $0x488] sm:$0xff]  }
 0x247   :  { %v5046_v41 = vadd.f32 %v1049_v31, %v485_v18  ;;  %v1051_v29 = vpop.f32.mrb[2].mxu0 }
 0x248   :  { %v1126_v42 = vmax.f32 %v5045_v21, 0.0  ;;  %v1053_v30 = vpop.f32.mrb[3].mxu0  ;;  %v5047_v24 = vadd.f32 %v1051_v29, %v490_v40  ;;  %v5268_v21 = vld [vmem:[#allocation3 + $0x4d0] sm:$0xff]   ;;  %v5270_v29 = vld [vmem:[#allocation3 + $0x148] sm:$0xff]  }
 0x249   :  { %v5048_v43 = vadd.f32 %v1053_v30, %v490_v40  ;;  %v1127_v44 = vmax.f32 %v5046_v41, 0.0  ;;  %v5267_v40 = vld [vmem:[#allocation3 + $0x100] sm:$0xff]  }
 0x24a   :  { %v4632_v34 = vpack.c.bf16 %v1126_v42, %v1126_v42  ;;  %v1128_v37 = vmax.f32 %v5047_v24, 0.0 }
 0x24b   :  { %v1129_v45 = vmax.f32 %v5048_v43, 0.0  ;;  %v4633_v35 = vpack.c.bf16 %v1127_v44, %v1127_v44  ;;  %v5269_v44 = vld [vmem:[#allocation3 + $0x490] sm:$0xff]  }
 0x24c   :  { %v4634_v41 = vpack.c.bf16 %v1128_v37, %v1128_v37  ;;  %v5289_v37 = vld [vmem:[#allocation3 + $0x4b8] sm:$0xff]  }
 0x24d   :  { %v4635_v48 = vpack.c.bf16 %v1129_v45, %v1129_v45  ;;  %v6091_v49 = vpop.f32.mrb[4].mxu0  ;;  %3517 = vmatprep.mubr.bf16.mxu1 %v4633_v35  ;;  %v5272_v35 = vld [vmem:[#allocation3 + $0x4d8] sm:$0xff]  }
 0x24e   :  { %v1059_v50 = vpop.f32.mrb[5].mxu0  ;;  %3518 = vmatmul.mubr.bf16.vlgmr.msra.gmra.mrb[0].mxu1 %v4632_v34  ;;  %v5271_v34 = vld [vmem:[#allocation3 + $0x108] sm:$0xff]  }
 0x24f   :  { %4687 = vmatpush3.bf16.msra.mxu1 %v5235_v46  ;;  %v6093_v51 = vpop.f32.mrb[6].mxu0  ;;  %3557 = vmatprep.mubr.bf16.mxu1 %v4635_v48  ;;  %v5050_v25 = vadd.f32 %v1059_v50, %v6113_v17  ;;  %v5274_v48 = vld [vmem:[#allocation3 + $0x150] sm:$0xff]   ;;  %v5273_v50 = vld [vmem:[#allocation3 + $0x498] sm:$0xff]  }
 0x250   :  { %v6095_v53 = vpop.f32.mrb[7].mxu0  ;;  %4688 = vmatprep.subr.bf16.mxu1 %v5238_v47 }
 0x251   :  { %v1131_v38 = vmax.f32 %v5050_v25, 0.0  ;;  %v5288_v25 = vld [vmem:[#allocation3 + $0x4f8] sm:$0xff]  }
 0x253   :  { %4689 = vmatpush3.bf16.msra.mxu1 %v5239_v52  ;;  %v4637_v42 = vpack.c.bf16 %v1131_v38, %v1131_v38  ;;  %v5276_v52 = vld [vmem:[#allocation3 + $0x4e0] sm:$0xff]   ;;  %v5049_v38 = vadd.f32 %v6091_v49, %v6113_v17  ;;  %v5297_v49 = vld [vmem:[#allocation3 + $0x588] sm:$0xff]   ;;  %v5300_v17 = vld [vmem:[#allocation3 + $0x5d0] sm:$0xff]  }
 0x254   :  { %4690 = vmatprep.subr.bf16.mxu1 %v5242_v54  ;;  %v5275_v54 = vld [vmem:[#allocation3 + $0x110] sm:$0xff]  }
 0x255   :  { %v6099_v58 = vpop.f32.mrb[8].mxu0 }
 0x256   :  { %v6101_v59 = vpop.f32.mrb[9].mxu0 }
 0x257   :  { %4691 = vmatpush3.bf16.msra.mxu1 %v5243_v56  ;;  %v6103_v60 = vpop.f32.mrb[10].mxu0  ;;  %v5278_v56 = vld [vmem:[#allocation3 + $0x158] sm:$0xff]  }
 0x258   :  { %v6105_v62 = vpop.f32.mrb[11].mxu0  ;;  %4692 = vmatprep.subr.bf16.mxu1 %v5246_v57 }
 0x25b   :  { %4693 = vmatpush3.bf16.msra.mxu1 %v5247_v61  ;;  %v5277_v61 = vld [vmem:[#allocation3 + $0x4a0] sm:$0xff]  }
 0x25c   :  { %4694 = vmatprep.subr.bf16.mxu1 %v5250_v63 }
 0x25d   :  { %v6109_v5 = vpop.f32.mrb[12].mxu0 }
 0x25e   :  { %v6111_v6 = vpop.f32.mrb[13].mxu0 }
 0x25f   :  { %4695 = vmatpush3.bf16.msra.mxu1 %v5251_v2  ;;  %v1081_v9 = vpop.f32.mrb[14].mxu0  ;;  %v5280_v2 = vld [vmem:[#allocation3 + $0x4e8] sm:$0xff]  }
 0x260   :  { %v5059_v13 = vadd.f32 %v1081_v9, %v520_v8  ;;  %v1083_v14 = vpop.f32.mrb[15].mxu0  ;;  %4696 = vmatprep.subr.bf16.mxu1 %v5254_v4 }
 0x261   :  { %v5060_v16 = vadd.f32 %v1083_v14, %v520_v8  ;;  %v5279_v8 = vld [vmem:[#allocation3 + $0x118] sm:$0xff]   ;;  %v5284_v14 = vld [vmem:[#allocation3 + $0x4f0] sm:$0xff]  }
 0x262   :  { %v1140_v19 = vmax.f32 %v5059_v13, 0.0  ;;  %v5281_v13 = vld [vmem:[#allocation3 + $0x4a8] sm:$0xff]  }
 0x263   :  { %v1141_v22 = vmax.f32 %v5060_v16, 0.0  ;;  %4697 = vmatpush3.bf16.msra.mxu1 %v5255_v12  ;;  %v5282_v12 = vld [vmem:[#allocation3 + $0x160] sm:$0xff]   ;;  %v5286_v16 = vld [vmem:[#allocation3 + $0x168] sm:$0xff]  }
 0x264   :  { %4698 = vmatprep.subr.bf16.mxu1 %v5258_v15  ;;  %v4646_v32 = vpack.c.bf16 %v1140_v19, %v1140_v19  ;;  %v5283_v15 = vld [vmem:[#allocation3 + $0x120] sm:$0xff]  }
 0x265   :  { %v4647_v26 = vpack.c.bf16 %v1141_v22, %v1141_v22  ;;  %v6116_v27 = vpop.f32.mrb[16].mxu0  ;;  %v5285_v22 = vld [vmem:[#allocation3 + $0x4b0] sm:$0xff]  }
 0x266   :  { %v6118_v33 = vpop.f32.mrb[17].mxu0 }
 0x267   :  { %4699 = vmatpush3.bf16.msra.mxu1 %v5259_v23  ;;  %v6120_v36 = vpop.f32.mrb[18].mxu0  ;;  %3797 = vmatprep.mubr.bf16.mxu0 %v4647_v26  ;;  %v6141_v23 = vpop.permute.xlu0 %539 }
 0x268   :  { %v1093_v11 = vpop.f32.mrb[19].mxu0  ;;  %3798 = vmatmul.mubr.bf16.vlgmr.msra.gmra.mrb[32].mxu0 %v4646_v32  ;;  %4700 = vmatprep.subr.bf16.mxu1 %v5262_v1  ;;  %v5063_v24 = vadd.f32 %v6120_v36, %v6122_v7  ;;  %v5287_v32 = vld [vmem:[#allocation3 + $0x128] sm:$0xff]  }
 0x269   :  { %v5064_v18 = vadd.f32 %v1093_v11, %v6122_v7  ;;  %4863 = vmatpush3.bf16.msra.mxu0 %v5261_v28  ;;  %v5291_v7 = vld [vmem:[#allocation3 + $0x130] sm:$0xff]  }
 0x26a   :  { %4864 = vmatprep.subr.bf16.mxu0 %v5264_v3  ;;  %v1144_v11 = vmax.f32 %v5063_v24, 0.0  ;;  %v5315_v24 = vld [vmem:[#allocation3 + $0x1a0] sm:$0xff]  }
 0x26b   :  { %v1145_v31 = vmax.f32 %v5064_v18, 0.0  ;;  %4701 = vmatpush3.bf16.msra.mxu1 %v5263_v10  ;;  %v5290_v10 = vld [vmem:[#allocation3 + $0x170] sm:$0xff]   ;;  %v5294_v18 = vld [vmem:[#allocation3 + $0x178] sm:$0xff]  }
 0x26c   :  { %4708 = vmatprep.subr.bf16.mxu1 %v5266_v20  ;;  %v5292_v20 = vld [vmem:[#allocation3 + $0x5c0] sm:$0xff]  }
 0x26d   :  { %v4651_v30 = vpack.c.bf16 %v1145_v31, %v1145_v31  ;;  %4865 = vmatpush3.bf16.msra.mxu0 %v5265_v39  ;;  %v6125_v43 = vpop.f32.mrb[20].mxu0  ;;  %v5052_v39 = vadd.f32 %v6095_v53, %v6097_v55  ;;  %v4650_v31 = vpack.c.bf16 %v1144_v11, %v1144_v11  ;;  %v5299_v53 = vld [vmem:[#allocation3 + $0x180] sm:$0xff]  }
 0x26e   :  { %3558 = vmatmul.mubr.bf16.vlgmr.msra.gmra.mrb[4].mxu1 %v4634_v41  ;;  %v6127_v45 = vpop.f32.mrb[21].mxu0  ;;  %4866 = vmatprep.subr.bf16.mxu0 %v5268_v21  ;;  %v5293_v21 = vld [vmem:[#allocation3 + $0x580] sm:$0xff]  }
 0x26f   :  { %4709 = vmatpush3.bf16.msra.mxu1 %v5267_v40  ;;  %3597 = vmatprep.mubr.bf16.mxu1 %v4637_v42  ;;  %v6129_v46 = vpop.f32.mrb[22].mxu0  ;;  %v5296_v40 = vld [vmem:[#allocation3 + $0x5c8] sm:$0xff]   ;;  %v1130_v42 = vmax.f32 %v5049_v38, 0.0 }
 0x270   :  { %3877 = vmatprep.mubr.bf16.mxu0 %v4651_v30  ;;  %v1103_v47 = vpop.f32.mrb[23].mxu0  ;;  %4710 = vmatprep.subr.bf16.mxu1 %v5270_v29  ;;  %v5295_v29 = vld [vmem:[#allocation3 + $0x138] sm:$0xff]   ;;  %v5298_v30 = vld [vmem:[#allocation3 + $0x1c0] sm:$0xff]  }
 0x271   :  { %4867 = vmatpush3.bf16.msra.mxu0 %v5269_v44  ;;  %v5068_v26 = vadd.f32 %v1103_v47, %v6141_v23  ;;  %v1133_v44 = vmax.f32 %v5052_v39, 0.0 }
 0x272   :  { %4868 = vmatprep.subr.bf16.mxu0 %v5272_v35  ;;  %v4636_v35 = vpack.c.bf16 %v1130_v42, %v1130_v42 }
 0x273   :  { %4711 = vmatpush3.bf16.msra.mxu1 %v5271_v34  ;;  %v1149_v36 = vmax.f32 %v5068_v26, 0.0  ;;  %v5302_v34 = vld [vmem:[#allocation3 + $0x1c8] sm:$0xff]   ;;  %v4639_v47 = vpack.c.bf16 %v1133_v44, %v1133_v44  ;;  %v5317_v26 = vld [vmem:[#allocation3 + $0x5b0] sm:$0xff]  }
 0x274   :  { %4712 = vmatprep.subr.bf16.mxu1 %v5274_v48  ;;  %v5301_v48 = vld [vmem:[#allocation3 + $0x590] sm:$0xff]  }
 0x275   :  { %4869 = vmatpush3.bf16.msra.mxu0 %v5273_v50  ;;  %v6131_v57 = vpop.f32.mrb[24].mxu0  ;;  %v4655_v41 = vpack.c.bf16 %v1149_v36, %v1149_v36  ;;  %v5304_v50 = vld [vmem:[#allocation3 + $0x5d8] sm:$0xff]   ;;  %v5322_v36 = vld [vmem:[#allocation3 + $0x1f0] sm:$0xff]  }
 0x276   :  { %v6133_v63 = vpop.f32.mrb[25].mxu0  ;;  %4870 = vmatprep.subr.bf16.mxu0 %v5276_v52  ;;  %v5303_v52 = vld [vmem:[#allocation3 + $0x188] sm:$0xff]  }
 0x277   :  { %4713 = vmatpush3.bf16.msra.mxu1 %v5275_v54  ;;  %v6135_v4 = vpop.f32.mrb[26].mxu0  ;;  %v5306_v54 = vld [vmem:[#allocation3 + $0x1d0] sm:$0xff]  }
 0x278   :  { %v6137_v9 = vpop.f32.mrb[27].mxu0  ;;  %4714 = vmatprep.subr.bf16.mxu1 %v5278_v56  ;;  %v5305_v56 = vld [vmem:[#allocation3 + $0x598] sm:$0xff]  }
 0x279   :  { %4871 = vmatpush3.bf16.msra.mxu0 %v5277_v61  ;;  %v5308_v61 = vld [vmem:[#allocation3 + $0x5e0] sm:$0xff]  }
 0x27a   :  { %4872 = vmatprep.subr.bf16.mxu0 %v5280_v2  ;;  %v5307_v2 = vld [vmem:[#allocation3 + $0x190] sm:$0xff]  }
 0x27b   :  { %4715 = vmatpush3.bf16.msra.mxu1 %v5279_v8  ;;  %v5310_v8 = vld [vmem:[#allocation3 + $0x1d8] sm:$0xff]  }
 0x27c   :  { %4716 = vmatprep.subr.bf16.mxu1 %v5282_v12  ;;  %v5309_v12 = vld [vmem:[#allocation3 + $0x5a0] sm:$0xff]  }
 0x27d   :  { %4873 = vmatpush3.bf16.msra.mxu0 %v5281_v13  ;;  %v6139_v19 = vpop.f32.mrb[28].mxu0  ;;  %v5312_v13 = vld [vmem:[#allocation3 + $0x5e8] sm:$0xff]  }
 0x27e   :  { %v6145_v1 = vpop.f32.mrb[29].mxu0  ;;  %4874 = vmatprep.subr.bf16.mxu0 %v5284_v14  ;;  %v5311_v14 = vld [vmem:[#allocation3 + $0x198] sm:$0xff]  }
 0x27f   :  { %4717 = vmatpush3.bf16.msra.mxu1 %v5283_v15  ;;  %v6148_v28 = vpop.f32.mrb[30].mxu0  ;;  %v5314_v15 = vld [vmem:[#allocation3 + $0x1e0] sm:$0xff]  }
 0x280   :  { %v6150_v3 = vpop.f32.mrb[31].mxu0  ;;  %4718 = vmatprep.subr.bf16.mxu1 %v5286_v16  ;;  %v5313_v16 = vld [vmem:[#allocation3 + $0x5a8] sm:$0xff]  }
 0x281   :  { %4875 = vmatpush3.bf16.msra.mxu0 %v5285_v22  ;;  %v5316_v22 = vld [vmem:[#allocation3 + $0x5f0] sm:$0xff]  }
 0x282   :  { %4876 = vmatprep.subr.bf16.mxu0 %v5288_v25  ;;  %v5318_v25 = vld [vmem:[#allocation3 + $0x1e8] sm:$0xff]  }
 0x283   :  { %4719 = vmatpush3.bf16.msra.mxu1 %v5287_v32  ;;  %v6156_v32 = vpop.permute.xlu0 %549 }
 0x284   :  { %4720 = vmatprep.subr.bf16.mxu1 %v5290_v10  ;;  %v5067_v10 = vadd.f32 %v6129_v46, %v6141_v23  ;;  %v5072_v11 = vadd.f32 %v6137_v9, %v6156_v32  ;;  %v5051_v46 = vadd.f32 %v6093_v51, %v6097_v55  ;;  %v6164_v23 = vpop.permute.xlu1 %504  ;;  %v5329_v55 = vld [vmem:[#allocation3 + $0x688] sm:$0xff]  }
 0x285   :  { %4877 = vmatpush3.bf16.msra.mxu0 %v5289_v37  ;;  %v5320_v37 = vld [vmem:[#allocation3 + $0x5f8] sm:$0xff]   ;;  %v5054_v9 = vadd.f32 %v6101_v59, %v6164_v23  ;;  %v5331_v59 = vld [vmem:[#allocation3 + $0x200] sm:$0xff]  }
 0x286   :  { %4906 = vmatprep.subr.bf16.mxu0 %v5292_v20  ;;  %v5319_v20 = vld [vmem:[#allocation3 + $0x1a8] sm:$0xff]   ;;  %v1148_v38 = vmax.f32 %v5067_v10, 0.0  ;;  %v1153_v39 = vmax.f32 %v5072_v11, 0.0  ;;  %v1132_v44 = vmax.f32 %v5051_v46, 0.0  ;;  %v5071_v10 = vadd.f32 %v6135_v4, %v6156_v32  ;;  %v5358_v32 = vld [vmem:[#allocation3 + $0x278] sm:$0xff]   ;;  %v5357_v46 = vld [vmem:[#allocation3 + $0x780] sm:$0xff]  }
 0x287   :  { %4721 = vmatpush3.bf16.msra.mxu1 %v5291_v7  ;;  %v5321_v7 = vld [vmem:[#allocation3 + $0x5b8] sm:$0xff]   ;;  %v1135_v51 = vmax.f32 %v5054_v9, 0.0  ;;  %v5053_v4 = vadd.f32 %v6099_v58, %v6164_v23  ;;  %v5360_v9 = vld [vmem:[#allocation3 + $0x7c8] sm:$0xff]   ;;  %v5364_v23 = vld [vmem:[#allocation3 + $0x7d0] sm:$0xff]  }
 0x288   :  { %3878 = vmatmul.mubr.bf16.vlgmr.msra.gmra.mrb[36].mxu0 %v4650_v31  ;;  %4722 = vmatprep.subr.bf16.mxu1 %v5294_v18  ;;  %v5324_v18 = vld [vmem:[#allocation3 + $0x6c0] sm:$0xff]   ;;  %v5326_v31 = vld [vmem:[#allocation3 + $0x1f8] sm:$0xff]   ;;  %v4659_v42 = vpack.c.bf16 %v1153_v39, %v1153_v39  ;;  %v5361_v58 = vld [vmem:[#allocation3 + $0x788] sm:$0xff]  }
 0x289   :  { %4907 = vmatpush3.bf16.msra.mxu0 %v5293_v21  ;;  %3957 = vmatprep.mubr.bf16.mxu0 %v4655_v41  ;;  %v5323_v21 = vld [vmem:[#allocation3 + $0x1b0] sm:$0xff]   ;;  %v4654_v41 = vpack.c.bf16 %v1148_v38, %v1148_v38  ;;  %v1152_v38 = vmax.f32 %v5071_v10, 0.0 }
 0x28a   :  { %4908 = vmatprep.subr.bf16.mxu0 %v5296_v40  ;;  %v5325_v40 = vld [vmem:[#allocation3 + $0x680] sm:$0xff]   ;;  %v5387_v10 = vld [vmem:[#allocation3 + $0x2b0] sm:$0xff]  }
 0x28b   :  { %4723 = vmatpush3.bf16.msra.mxu1 %v5295_v29  ;;  %v5328_v29 = vld [vmem:[#allocation3 + $0x6c8] sm:$0xff]  }
 0x28c   :  { %4730 = vmatprep.subr.bf16.mxu1 %v5298_v30  ;;  %v5327_v30 = vld [vmem:[#allocation3 + $0x1b8] sm:$0xff]  }
 0x28d   :  { %4909 = vmatpush3.bf16.msra.mxu0 %v5297_v49  ;;  %v5330_v49 = vld [vmem:[#allocation3 + $0x240] sm:$0xff]  }
 0x28e   :  { %3598 = vmatmul.mubr.bf16.vlgmr.msra.gmra.mrb[8].mxu1 %v4636_v35  ;;  %4910 = vmatprep.subr.bf16.mxu0 %v5300_v17  ;;  %v5332_v17 = vld [vmem:[#allocation3 + $0x6d0] sm:$0xff]   ;;  %v5334_v35 = vld [vmem:[#allocation3 + $0x248] sm:$0xff]  }
 0x28f   :  { %4731 = vmatpush3.bf16.msra.mxu1 %v5299_v53  ;;  %3637 = vmatprep.mubr.bf16.mxu1 %v4639_v47  ;;  %v4638_v53 = vpack.c.bf16 %v1132_v44, %v1132_v44  ;;  %v5333_v47 = vld [vmem:[#allocation3 + $0x690] sm:$0xff]  }
 0x290   :  { %4732 = vmatprep.subr.bf16.mxu1 %v5302_v34  ;;  %v4641_v34 = vpack.c.bf16 %v1135_v51, %v1135_v51 }
 0x291   :  { %4911 = vmatpush3.bf16.msra.mxu0 %v5301_v48  ;;  %v5336_v48 = vld [vmem:[#allocation3 + $0x6d8] sm:$0xff]  }
 0x292   :  { %4912 = vmatprep.subr.bf16.mxu0 %v5304_v50  ;;  %v5335_v50 = vld [vmem:[#allocation3 + $0x208] sm:$0xff]  }
 0x293   :  { %4733 = vmatpush3.bf16.msra.mxu1 %v5303_v52  ;;  %v5338_v52 = vld [vmem:[#allocation3 + $0x250] sm:$0xff]  }
 0x294   :  { %4734 = vmatprep.subr.bf16.mxu1 %v5306_v54  ;;  %v5337_v54 = vld [vmem:[#allocation3 + $0x698] sm:$0xff]  }
 0x295   :  { %4913 = vmatpush3.bf16.msra.mxu0 %v5305_v56  ;;  %v5340_v56 = vld [vmem:[#allocation3 + $0x6e0] sm:$0xff]  }
 0x296   :  { %4914 = vmatprep.subr.bf16.mxu0 %v5308_v61  ;;  %v5339_v61 = vld [vmem:[#allocation3 + $0x210] sm:$0xff]  }
 0x297   :  { %4735 = vmatpush3.bf16.msra.mxu1 %v5307_v2  ;;  %v5342_v2 = vld [vmem:[#allocation3 + $0x258] sm:$0xff]  }
 0x298   :  { %4736 = vmatprep.subr.bf16.mxu1 %v5310_v8  ;;  %v5341_v8 = vld [vmem:[#allocation3 + $0x6a0] sm:$0xff]  }
 0x299   :  { %4915 = vmatpush3.bf16.msra.mxu0 %v5309_v12  ;;  %v5344_v12 = vld [vmem:[#allocation3 + $0x6e8] sm:$0xff]  }
 0x29a   :  { %4916 = vmatprep.subr.bf16.mxu0 %v5312_v13  ;;  %v5343_v13 = vld [vmem:[#allocation3 + $0x218] sm:$0xff]  }
 0x29b   :  { %4737 = vmatpush3.bf16.msra.mxu1 %v5311_v14  ;;  %v5346_v14 = vld [vmem:[#allocation3 + $0x260] sm:$0xff]  }
 0x29c   :  { %4738 = vmatprep.subr.bf16.mxu1 %v5314_v15  ;;  %v5345_v15 = vld [vmem:[#allocation3 + $0x6a8] sm:$0xff]  }
 0x29d   :  { %4917 = vmatpush3.bf16.msra.mxu0 %v5313_v16  ;;  %v5348_v16 = vld [vmem:[#allocation3 + $0x6f0] sm:$0xff]  }
 0x29e   :  { %4918 = vmatprep.subr.bf16.mxu0 %v5316_v22  ;;  %v5347_v22 = vld [vmem:[#allocation3 + $0x220] sm:$0xff]  }
 0x29f   :  { %4739 = vmatpush3.bf16.msra.mxu1 %v5315_v24  ;;  %v5350_v24 = vld [vmem:[#allocation3 + $0x268] sm:$0xff]  }
 0x2a0   :  { %4740 = vmatprep.subr.bf16.mxu1 %v5318_v25  ;;  %v5349_v25 = vld [vmem:[#allocation3 + $0x6b0] sm:$0xff]  }
 0x2a1   :  { %4919 = vmatpush3.bf16.msra.mxu0 %v5317_v26  ;;  %v6168_v26 = vpop.permute.xlu0 %559 }
 0x2a2   :  { %4920 = vmatprep.subr.bf16.mxu0 %v5320_v37  ;;  %v5352_v37 = vld [vmem:[#allocation3 + $0x6f8] sm:$0xff]   ;;  %v5076_v11 = vadd.f32 %v6150_v3, %v6168_v26  ;;  %v5056_v3 = vadd.f32 %v6105_v62, %v6107_v0  ;;  %v5363_v62 = vld [vmem:[#allocation3 + $0x280] sm:$0xff]  }
 0x2a3   :  { %4741 = vmatpush3.bf16.msra.mxu1 %v5319_v20  ;;  %v5351_v20 = vld [vmem:[#allocation3 + $0x228] sm:$0xff]  }
 0x2a4   :  { %4742 = vmatprep.subr.bf16.mxu1 %v5322_v36  ;;  %v5354_v36 = vld [vmem:[#allocation3 + $0x270] sm:$0xff]   ;;  %v1157_v39 = vmax.f32 %v5076_v11, 0.0  ;;  %v515_v11 = vpop.permute.xlu1 %514 }
 0x2a5   :  { %4921 = vmatpush3.bf16.msra.mxu0 %v5321_v7  ;;  %v5353_v7 = vld [vmem:[#allocation3 + $0x6b8] sm:$0xff]  }
 0x2a6   :  { %4950 = vmatprep.subr.bf16.mxu0 %v5324_v18  ;;  %v5356_v18 = vld [vmem:[#allocation3 + $0x7c0] sm:$0xff]  }
 0x2a7   :  { %4743 = vmatpush3.bf16.msra.mxu1 %v5323_v21  ;;  %v5355_v21 = vld [vmem:[#allocation3 + $0x230] sm:$0xff]  }
 0x2a8   :  { %3958 = vmatmul.mubr.bf16.vlgmr.msra.gmra.mrb[40].mxu0 %v4654_v41  ;;  %4744 = vmatprep.subr.bf16.mxu1 %v5326_v31  ;;  %v4658_v31 = vpack.c.bf16 %v1152_v38, %v1152_v38  ;;  %v5359_v41 = vld [vmem:[#allocation3 + $0x238] sm:$0xff]   ;;  %v5390_v38 = vld [vmem:[#allocation3 + $0x340] sm:$0xff]  }
 0x2a9   :  { %4951 = vmatpush3.bf16.msra.mxu0 %v5325_v40  ;;  %4037 = vmatprep.mubr.bf16.mxu0 %v4659_v42  ;;  %v4663_v40 = vpack.c.bf16 %v1157_v39, %v1157_v39  ;;  %v5362_v42 = vld [vmem:[#allocation3 + $0x2c0] sm:$0xff]  }
 0x2aa   :  { %4952 = vmatprep.subr.bf16.mxu0 %v5328_v29  ;;  %v1134_v29 = vmax.f32 %v5053_v4, 0.0  ;;  %v5391_v39 = vld [vmem:[#allocation3 + $0x300] sm:$0xff]   ;;  %v5392_v4 = vld [vmem:[#allocation3 + $0x348] sm:$0xff]  }
 0x2ab   :  { %4745 = vmatpush3.bf16.msra.mxu1 %v5327_v30  ;;  %v1137_v30 = vmax.f32 %v5056_v3, 0.0  ;;  %v5396_v3 = vld [vmem:[#allocation3 + $0x358] sm:$0xff]  }
 0x2ac   :  { %4752 = vmatprep.subr.bf16.mxu1 %v5330_v49  ;;  %v4640_v44 = vpack.c.bf16 %v1134_v29, %v1134_v29  ;;  %v5366_v49 = vld [vmem:[#allocation3 + $0x2c8] sm:$0xff]   ;;  %v5402_v29 = vld [vmem:[#allocation3 + $0x370] sm:$0xff]  }
 0x2ad   :  { %4953 = vmatpush3.bf16.msra.mxu0 %v5329_v55  ;;  %v4643_v51 = vpack.c.bf16 %v1137_v30, %v1137_v30  ;;  %v5365_v55 = vld [vmem:[#allocation3 + $0x790] sm:$0xff]   ;;  %v5057_v30 = vadd.f32 %v6109_v5, %v515_v11  ;;  %v5409_v5 = vld [vmem:[#allocation3 + $0x408] sm:$0xff]  }
 0x2ae   :  { %3638 = vmatmul.mubr.bf16.vlgmr.msra.gmra.mrb[12].mxu1 %v4638_v53  ;;  %4954 = vmatprep.subr.bf16.mxu0 %v5332_v17  ;;  %v5368_v17 = vld [vmem:[#allocation3 + $0x7d8] sm:$0xff]   ;;  %v5370_v53 = vld [vmem:[#allocation3 + $0x2d0] sm:$0xff]  }
 0x2af   :  { %4753 = vmatpush3.bf16.msra.mxu1 %v5331_v59  ;;  %3677 = vmatprep.mubr.bf16.mxu1 %v4641_v34  ;;  %v5367_v59 = vld [vmem:[#allocation3 + $0x288] sm:$0xff]   ;;  %v5372_v34 = vld [vmem:[#allocation3 + $0x7e0] sm:$0xff]  }
 0x2b0   :  { %4754 = vmatprep.subr.bf16.mxu1 %v5334_v35  ;;  %v5369_v35 = vld [vmem:[#allocation3 + $0x798] sm:$0xff]  }
 0x2b1   :  { %4955 = vmatpush3.bf16.msra.mxu0 %v5333_v47  ;;  %v5371_v47 = vld [vmem:[#allocation3 + $0x290] sm:$0xff]  }
 0x2b2   :  { %4956 = vmatprep.subr.bf16.mxu0 %v5336_v48  ;;  %v5374_v48 = vld [vmem:[#allocation3 + $0x2d8] sm:$0xff]  }
 0x2b3   :  { %4755 = vmatpush3.bf16.msra.mxu1 %v5335_v50  ;;  %v5373_v50 = vld [vmem:[#allocation3 + $0x7a0] sm:$0xff]  }
 0x2b4   :  { %4756 = vmatprep.subr.bf16.mxu1 %v5338_v52  ;;  %v5376_v52 = vld [vmem:[#allocation3 + $0x7e8] sm:$0xff]  }
 0x2b5   :  { %4957 = vmatpush3.bf16.msra.mxu0 %v5337_v54  ;;  %v5375_v54 = vld [vmem:[#allocation3 + $0x298] sm:$0xff]  }
 0x2b6   :  { %4958 = vmatprep.subr.bf16.mxu0 %v5340_v56  ;;  %v5378_v56 = vld [vmem:[#allocation3 + $0x2e0] sm:$0xff]  }
 0x2b7   :  { %4757 = vmatpush3.bf16.msra.mxu1 %v5339_v61  ;;  %v5377_v61 = vld [vmem:[#allocation3 + $0x7a8] sm:$0xff]  }
 0x2b8   :  { %4758 = vmatprep.subr.bf16.mxu1 %v5342_v2  ;;  %v5380_v2 = vld [vmem:[#allocation3 + $0x7f0] sm:$0xff]  }
 0x2b9   :  { %4959 = vmatpush3.bf16.msra.mxu0 %v5341_v8  ;;  %v5379_v8 = vld [vmem:[#allocation3 + $0x2a0] sm:$0xff]  }
 0x2ba   :  { %4960 = vmatprep.subr.bf16.mxu0 %v5344_v12  ;;  %v5382_v12 = vld [vmem:[#allocation3 + $0x2e8] sm:$0xff]  }
 0x2bb   :  { %4759 = vmatpush3.bf16.msra.mxu1 %v5343_v13  ;;  %v5381_v13 = vld [vmem:[#allocation3 + $0x7b0] sm:$0xff]  }
 0x2bc   :  { %4760 = vmatprep.subr.bf16.mxu1 %v5346_v14  ;;  %v5075_v14 = vadd.f32 %v6148_v28, %v6168_v26  ;;  %v5058_v28 = vadd.f32 %v6111_v6, %v515_v11  ;;  %v5394_v6 = vld [vmem:[#allocation3 + $0x350] sm:$0xff]   ;;  %v5422_v11 = vld [vmem:[#allocation3 + $0x540] sm:$0xff]  }
 0x2bd   :  { %4961 = vmatpush3.bf16.msra.mxu0 %v5345_v15  ;;  %v5384_v15 = vld [vmem:[#allocation3 + $0x7f8] sm:$0xff]  }
 0x2be   :  { %4962 = vmatprep.subr.bf16.mxu0 %v5348_v16  ;;  %v5383_v16 = vld [vmem:[#allocation3 + $0x2a8] sm:$0xff]  }
 0x2bf   :  { %4761 = vmatpush3.bf16.msra.mxu1 %v5347_v22  ;;  %v5386_v22 = vld [vmem:[#allocation3 + $0x2f0] sm:$0xff]  }
 0x2c0   :  { %4762 = vmatprep.subr.bf16.mxu1 %v5350_v24  ;;  %v5385_v24 = vld [vmem:[#allocation3 + $0x7b8] sm:$0xff]  }
 0x2c1   :  { %4963 = vmatpush3.bf16.msra.mxu0 %v5349_v25  ;;  %v1156_v25 = vmax.f32 %v5075_v14, 0.0  ;;  %v5419_v14 = vld [vmem:[#allocation3 + $0x430] sm:$0xff]  }
 0x2c2   :  { %4964 = vmatprep.subr.bf16.mxu0 %v5352_v37  ;;  %v5055_v37 = vadd.f32 %v6103_v60, %v6107_v0  ;;  %v5393_v0 = vld [vmem:[#allocation3 + $0x308] sm:$0xff]  }
 0x2c3   :  { %4763 = vmatpush3.bf16.msra.mxu1 %v5351_v20  ;;  %v5388_v20 = vld [vmem:[#allocation3 + $0x2f8] sm:$0xff]   ;;  %v4662_v26 = vpack.c.bf16 %v1156_v25, %v1156_v25 }
 0x2c4   :  { %4764 = vmatprep.subr.bf16.mxu1 %v5354_v36  ;;  %v5389_v36 = vld [vmem:[#allocation3 + $0x2b8] sm:$0xff]  }
 0x2c5   :  { %4965 = vmatpush3.bf16.msra.mxu0 %v5353_v7  ;;  %v1136_v7 = vmax.f32 %v5055_v37, 0.0 }
 0x2c6   :  { %4994 = vmatprep.subr.bf16.mxu0 %v5356_v18  ;;  %v1139_v18 = vmax.f32 %v5058_v28, 0.0  ;;  %v5423_v28 = vld [vmem:[#allocation3 + $0x500] sm:$0xff]  }
 0x2c7   :  { %4765 = vmatpush3.bf16.msra.mxu1 %v5355_v21  ;;  %v4642_v21 = vpack.c.bf16 %v1136_v7, %v1136_v7 }
 0x2c8   :  { %4038 = vmatmul.mubr.bf16.vlgmr.msra.gmra.mrb[44].mxu0 %v4658_v31  ;;  %4766 = vmatprep.subr.bf16.mxu1 %v5358_v32  ;;  %v4645_v60 = vpack.c.bf16 %v1139_v18, %v1139_v18  ;;  %v5395_v32 = vld [vmem:[#allocation3 + $0x310] sm:$0xff]   ;;  %v5398_v31 = vld [vmem:[#allocation3 + $0x360] sm:$0xff]   ;;  %v5428_v18 = vld [vmem:[#allocation3 + $0x558] sm:$0xff]  }
 0x2c9   :  { %4995 = vmatpush3.bf16.msra.mxu0 %v5357_v46  ;;  %4117 = vmatprep.mubr.bf16.mxu0 %v4663_v40  ;;  %v5397_v46 = vld [vmem:[#allocation3 + $0x318] sm:$0xff]   ;;  %v5400_v40 = vld [vmem:[#allocation3 + $0x368] sm:$0xff]  }
 0x2ca   :  { %4996 = vmatprep.subr.bf16.mxu0 %v5360_v9  ;;  %v5399_v9 = vld [vmem:[#allocation3 + $0x320] sm:$0xff]  }
 0x2cb   :  { %4767 = vmatpush3.bf16.msra.mxu1 %v5359_v41  ;;  %v5401_v41 = vld [vmem:[#allocation3 + $0x328] sm:$0xff]  }
 0x2cc   :  { %4774 = vmatprep.subr.bf16.mxu1 %v5362_v42  ;;  %v5403_v42 = vld [vmem:[#allocation3 + $0x330] sm:$0xff]  }
 0x2cd   :  { %4997 = vmatpush3.bf16.msra.mxu0 %v5361_v58  ;;  %v525_v58 = vpop.permute.xlu1 %524 }
 0x2ce   :  { %3678 = vmatmul.mubr.bf16.vlgmr.msra.gmra.mrb[16].mxu1 %v4640_v44  ;;  %4998 = vmatprep.subr.bf16.mxu0 %v5364_v23  ;;  %v5404_v23 = vld [vmem:[#allocation3 + $0x378] sm:$0xff]  }
 0x2cf   :  { %4775 = vmatpush3.bf16.msra.mxu1 %v5363_v62  ;;  %3717 = vmatprep.mubr.bf16.mxu1 %v4643_v51  ;;  %v5062_v62 = vadd.f32 %v6118_v33, %v525_v58  ;;  %v5405_v44 = vld [vmem:[#allocation3 + $0x338] sm:$0xff]   ;;  %v5406_v51 = vld [vmem:[#allocation3 + $0x440] sm:$0xff]   ;;  %v5411_v33 = vld [vmem:[#allocation3 + $0x410] sm:$0xff]  }
 0x2d0   :  { %4776 = vmatprep.subr.bf16.mxu1 %v5366_v49  ;;  %v1138_v49 = vmax.f32 %v5057_v30, 0.0 }
 0x2d1   :  { %4999 = vmatpush3.bf16.msra.mxu0 %v5365_v55  ;;  %v1143_v55 = vmax.f32 %v5062_v62, 0.0 }
 0x2d2   :  { %5000 = vmatprep.subr.bf16.mxu0 %v5368_v17  ;;  %v5407_v17 = vld [vmem:[#allocation3 + $0x400] sm:$0xff]  }
 0x2d3   :  { %4777 = vmatpush3.bf16.msra.mxu1 %v5367_v59  ;;  %v4644_v59 = vpack.c.bf16 %v1138_v49, %v1138_v49 }
 0x2d4   :  { %4778 = vmatprep.subr.bf16.mxu1 %v5370_v53  ;;  %v5408_v53 = vld [vmem:[#allocation3 + $0x448] sm:$0xff]  }
 0x2d5   :  { %5001 = vmatpush3.bf16.msra.mxu0 %v5369_v35  ;;  %v4649_v35 = vpack.c.bf16 %v1143_v55, %v1143_v55 }
 0x2d6   :  { %5002 = vmatprep.subr.bf16.mxu0 %v5372_v34  ;;  %v5410_v34 = vld [vmem:[#allocation3 + $0x450] sm:$0xff]  }
 0x2d7   :  { %4779 = vmatpush3.bf16.msra.mxu1 %v5371_v47  ;;  %v5412_v47 = vld [vmem:[#allocation3 + $0x458] sm:$0xff]  }
 0x2d8   :  { %4780 = vmatprep.subr.bf16.mxu1 %v5374_v48  ;;  %v5413_v48 = vld [vmem:[#allocation3 + $0x418] sm:$0xff]  }
 0x2d9   :  { %5003 = vmatpush3.bf16.msra.mxu0 %v5373_v50  ;;  %v5414_v50 = vld [vmem:[#allocation3 + $0x460] sm:$0xff]  }
 0x2da   :  { %5004 = vmatprep.subr.bf16.mxu0 %v5376_v52  ;;  %v5415_v52 = vld [vmem:[#allocation3 + $0x420] sm:$0xff]  }
 0x2db   :  { %4781 = vmatpush3.bf16.msra.mxu1 %v5375_v54  ;;  %v5416_v54 = vld [vmem:[#allocation3 + $0x468] sm:$0xff]  }
 0x2dc   :  { %4782 = vmatprep.subr.bf16.mxu1 %v5378_v56  ;;  %v5417_v56 = vld [vmem:[#allocation3 + $0x428] sm:$0xff]  }
 0x2dd   :  { %5005 = vmatpush3.bf16.msra.mxu0 %v5377_v61  ;;  %v5418_v61 = vld [vmem:[#allocation3 + $0x470] sm:$0xff]  }
 0x2de   :  { %5006 = vmatprep.subr.bf16.mxu0 %v5380_v2 }
 0x2df   :  { %4783 = vmatpush3.bf16.msra.mxu1 %v5379_v8 }
 0x2e0   :  { %4784 = vmatprep.subr.bf16.mxu1 %v5382_v12 }
 0x2e1   :  { %5007 = vmatpush3.bf16.msra.mxu0 %v5381_v13 }
 0x2e2   :  { %5008 = vmatprep.subr.bf16.mxu0 %v5384_v15  ;;  %v535_v15 = vpop.permute.xlu1 %534 }
 0x2e3   :  { %4785 = vmatpush3.bf16.msra.mxu1 %v5383_v16  ;;  %v5061_v16 = vadd.f32 %v6116_v27, %v525_v58  ;;  %v5066_v25 = vadd.f32 %v6127_v45, %v535_v15  ;;  %v5425_v27 = vld [vmem:[#allocation3 + $0x508] sm:$0xff]   ;;  %v5427_v45 = vld [vmem:[#allocation3 + $0x510] sm:$0xff]  }
 0x2e4   :  { %4786 = vmatprep.subr.bf16.mxu1 %v5386_v22 }
 0x2e5   :  { %5009 = vmatpush3.bf16.msra.mxu0 %v5385_v24  ;;  %v5420_v24 = vld [vmem:[#allocation3 + $0x478] sm:$0xff]   ;;  %v1142_v37 = vmax.f32 %v5061_v16, 0.0  ;;  %v5449_v16 = vld [vmem:[#allocation3 + $0x628] sm:$0xff]  }
 0x2e6   :  { %v545_v62 = vpop.permute.xlu1 %544 }
 0x2e7   :  { %4787 = vmatpush3.bf16.msra.mxu1 %v5387_v10  ;;  %v5421_v10 = vld [vmem:[#allocation3 + $0x438] sm:$0xff]   ;;  %v5070_v55 = vadd.f32 %v6133_v63, %v545_v62  ;;  %v5443_v63 = vld [vmem:[#allocation3 + $0x610] sm:$0xff]  }
 0x2e8   :  { %4118 = vmatmul.mubr.bf16.vlgmr.msra.gmra.mrb[48].mxu0 %v4662_v26  ;;  %4788 = vmatprep.subr.bf16.mxu1 %v5388_v20  ;;  %v1147_v20 = vmax.f32 %v5066_v25, 0.0  ;;  %v4648_v26 = vpack.c.bf16 %v1142_v37, %v1142_v37 }
 0x2ea   :  { %v4653_v7 = vpack.c.bf16 %v1147_v20, %v1147_v20  ;;  %v555_v20 = vpop.permute.xlu1 %554 }
 0x2eb   :  { %4789 = vmatpush3.bf16.msra.mxu1 %v5389_v36  ;;  %v5424_v36 = vld [vmem:[#allocation3 + $0x548] sm:$0xff]  }
 0x2ec   :  { %4796 = vmatprep.subr.bf16.mxu1 %v5390_v38  ;;  %v5426_v38 = vld [vmem:[#allocation3 + $0x550] sm:$0xff]  }
 0x2ee   :  { %3718 = vmatmul.mubr.bf16.vlgmr.msra.gmra.mrb[20].mxu1 %v4642_v21  ;;  %v5430_v21 = vld [vmem:[#allocation3 + $0x560] sm:$0xff]  }
 0x2ef   :  { %4797 = vmatpush3.bf16.msra.mxu1 %v5391_v39  ;;  %3757 = vmatprep.mubr.bf16.mxu1 %v4645_v60  ;;  %v5429_v39 = vld [vmem:[#allocation3 + $0x518] sm:$0xff]   ;;  %v5431_v60 = vld [vmem:[#allocation3 + $0x520] sm:$0xff]  }
 0x2f0   :  { %4798 = vmatprep.subr.bf16.mxu1 %v5392_v4 }
 0x2f3   :  { %4799 = vmatpush3.bf16.msra.mxu1 %v5393_v0 }
 0x2f4   :  { %4800 = vmatprep.subr.bf16.mxu1 %v5394_v6  ;;  %v5432_v6 = vld [vmem:[#allocation3 + $0x568] sm:$0xff]  }
 0x2f7   :  { %4801 = vmatpush3.bf16.msra.mxu1 %v5395_v32 }
 0x2f8   :  { %4802 = vmatprep.subr.bf16.mxu1 %v5396_v3 }
 0x2fb   :  { %4803 = vmatpush3.bf16.msra.mxu1 %v5397_v46 }
 0x2fc   :  { %4804 = vmatprep.subr.bf16.mxu1 %v5398_v31  ;;  %v5433_v31 = vld [vmem:[#allocation3 + $0x528] sm:$0xff]  }
 0x2ff   :  { %4805 = vmatpush3.bf16.msra.mxu1 %v5399_v9  ;;  %v4318_v9 = vld [vmem:[%s6253_s4] ss:$0 sm:$0xff] }
 0x300   :  { %4806 = vmatprep.subr.bf16.mxu1 %v5400_v40  ;;  %v5434_v40 = vld [vmem:[#allocation3 + $0x570] sm:$0xff]  }
 0x303   :  { %4807 = vmatpush3.bf16.msra.mxu1 %v5401_v41 }
 0x304   :  { %4808 = vmatprep.subr.bf16.mxu1 %v5402_v29 }
 0x307   :  { %4809 = vmatpush3.bf16.msra.mxu1 %v5403_v42 }
 0x308   :  { %4810 = vmatprep.subr.bf16.mxu1 %v5404_v23  ;;  %v5435_v23 = vld [vmem:[#allocation3 + $0x530] sm:$0xff]  }
 0x30b   :  { %4811 = vmatpush3.bf16.msra.mxu1 %v5405_v44  ;;  %v5065_v44 = vadd.f32 %v6125_v43, %v535_v15  ;;  %v5441_v43 = vld [vmem:[#allocation3 + $0x608] sm:$0xff]  }
 0x30c   :  { %4840 = vmatprep.subr.bf16.mxu1 %v5406_v51  ;;  %v5436_v51 = vld [vmem:[#allocation3 + $0x578] sm:$0xff]  }
 0x30e   :  { %3758 = vmatmul.mubr.bf16.vlgmr.msra.gmra.mrb[24].mxu1 %v4644_v59  ;;  %v5437_v59 = vld [vmem:[#allocation3 + $0x538] sm:$0xff]  }
 0x30f   :  { %4841 = vmatpush3.bf16.msra.mxu1 %v5407_v17  ;;  %3837 = vmatprep.mubr.bf16.mxu1 %v4649_v35  ;;  %v5438_v35 = vld [vmem:[#allocation3 + $0x640] sm:$0xff]  }
 0x310   :  { %4842 = vmatprep.subr.bf16.mxu1 %v5408_v53  ;;  %v1146_v53 = vmax.f32 %v5065_v44, 0.0 }
 0x313   :  { %4843 = vmatpush3.bf16.msra.mxu1 %v5409_v5  ;;  %v1151_v5 = vmax.f32 %v5070_v55, 0.0 }
 0x314   :  { %4844 = vmatprep.subr.bf16.mxu1 %v5410_v34  ;;  %v5439_v34 = vld [vmem:[#allocation3 + $0x600] sm:$0xff]  }
 0x317   :  { %4845 = vmatpush3.bf16.msra.mxu1 %v5411_v33  ;;  %v4652_v33 = vpack.c.bf16 %v1146_v53, %v1146_v53 }
 0x318   :  { %4846 = vmatprep.subr.bf16.mxu1 %v5412_v47  ;;  %v5440_v47 = vld [vmem:[#allocation3 + $0x648] sm:$0xff]  }
 0x31b   :  { %4847 = vmatpush3.bf16.msra.mxu1 %v5413_v48  ;;  %v4657_v48 = vpack.c.bf16 %v1151_v5, %v1151_v5 }
 0x31c   :  { %4848 = vmatprep.subr.bf16.mxu1 %v5414_v50  ;;  %v5442_v50 = vld [vmem:[#allocation3 + $0x650] sm:$0xff]  }
 0x31f   :  { %4849 = vmatpush3.bf16.msra.mxu1 %v5415_v52  ;;  %v5444_v52 = vld [vmem:[#allocation3 + $0x658] sm:$0xff]  }
 0x320   :  { %4850 = vmatprep.subr.bf16.mxu1 %v5416_v54  ;;  %v5445_v54 = vld [vmem:[#allocation3 + $0x618] sm:$0xff]  }
 0x321   :  { %v4680_v2 = vpop.f32.mrb[0].mxu1 }
 0x322   :  { %v4681_v8 = vpop.f32.mrb[1].mxu1 }
 0x323   :  { %v4682_v12 = vadd.f32 %v4681_v8, %v4680_v2  ;;  %4851 = vmatpush3.bf16.msra.mxu1 %v5417_v56  ;;  %v4683_v13 = vpop.f32.mrb[2].mxu1  ;;  %v5446_v56 = vld [vmem:[#allocation3 + $0x660] sm:$0xff]  }
 0x324   :  { %v4684_v22 = vpop.f32.mrb[3].mxu1  ;;  %4852 = vmatprep.subr.bf16.mxu1 %v5418_v61  ;;  %v5447_v2 = vld [vmem:[#allocation3 + $0x620] sm:$0xff]  }
 0x325   :  { %v3520_v42 = vadd.f32 %v4682_v12, %v4318_v9  ;;  %v5448_v12 = vld [vmem:[#allocation3 + $0x668] sm:$0xff]   ;;  %v5450_v22 = vld [vmem:[#allocation3 + $0x670] sm:$0xff]  }
 0x327   :  { %4853 = vmatpush3.bf16.msra.mxu1 %v5419_v14 }
 0x328   :  { %4854 = vmatprep.subr.bf16.mxu1 %v5420_v24 }
 0x32b   :  { %4855 = vmatpush3.bf16.msra.mxu1 %v5421_v10 }
 0x32c   :  { %4884 = vmatprep.subr.bf16.mxu1 %v5422_v11  ;;  %v5451_v11 = vld [vmem:[#allocation3 + $0x630] sm:$0xff]  }
 0x32e   :  { %3838 = vmatmul.mubr.bf16.vlgmr.msra.gmra.mrb[28].mxu1 %v4648_v26 }
 0x32f   :  { %4885 = vmatpush3.bf16.msra.mxu1 %v5423_v28  ;;  %3917 = vmatprep.mubr.bf16.mxu1 %v4653_v7  ;;  %v5069_v28 = vadd.f32 %v6131_v57, %v545_v62  ;;  %v5074_v7 = vadd.f32 %v6145_v1, %v555_v20  ;;  %v5457_v57 = vld [vmem:[#allocation3 + $0x708] sm:$0xff]   ;;  %v5459_v1 = vld [vmem:[#allocation3 + $0x710] sm:$0xff]  }
 0x330   :  { %4886 = vmatprep.subr.bf16.mxu1 %v5424_v36  ;;  %v5452_v36 = vld [vmem:[#allocation3 + $0x678] sm:$0xff]   ;;  %v5466_v62 = vld [vmem:[#allocation3 + $0x770] sm:$0xff]  }
 0x333   :  { %4887 = vmatpush3.bf16.msra.mxu1 %v5425_v27 }
 0x334   :  { %4888 = vmatprep.subr.bf16.mxu1 %v5426_v38  ;;  %v5453_v38 = vld [vmem:[#allocation3 + $0x638] sm:$0xff]  }
 0x337   :  { %4889 = vmatpush3.bf16.msra.mxu1 %v5427_v45  ;;  %v1150_v45 = vmax.f32 %v5069_v28, 0.0  ;;  %v5470_v28 = vld [vmem:[%s6254_s5] sm:$0xff]  }
 0x338   :  { %4890 = vmatprep.subr.bf16.mxu1 %v5428_v18  ;;  %v5454_v18 = vld [vmem:[#allocation3 + $0x740] sm:$0xff]  }
 0x33b   :  { %4891 = vmatpush3.bf16.msra.mxu1 %v5429_v39  ;;  %v4834_v4 = vpop.f32.mrb[32].mxu0  ;;  %v1155_v39 = vmax.f32 %v5074_v7, 0.0  ;;  %v5472_v7 = vld [vmem:[%s6254_s5 + $0x10] sm:$0xff]  }
 0x33c   :  { %v4835_v0 = vpop.f32.mrb[33].mxu0  ;;  %4892 = vmatprep.subr.bf16.mxu1 %v5430_v21  ;;  %v5455_v21 = vld [vmem:[#allocation3 + $0x700] sm:$0xff]  }
 0x33d   :  { %v6187_v32 = vadd.f32 %v4835_v0, %v4834_v4  ;;  %v4837_v3 = vpop.f32.mrb[34].mxu0  ;;  %v4656_v4 = vpack.c.bf16 %v1150_v45, %v1150_v45  ;;  %v4661_v0 = vpack.c.bf16 %v1155_v39, %v1155_v39  ;;  %v5475_v45 = vld [vmem:[%s6254_s5 + $0x28] sm:$0xff]  }
 0x33e   :  { %v4838_v46 = vpop.f32.mrb[35].mxu0  ;;  %v5460_v3 = vld [vmem:[#allocation3 + $0x758] sm:$0xff]  }
 0x33f   :  { %4893 = vmatpush3.bf16.msra.mxu1 %v5431_v60  ;;  %v5456_v60 = vld [vmem:[#allocation3 + $0x748] sm:$0xff]   ;;  %v5461_v46 = vld [vmem:[#allocation3 + $0x718] sm:$0xff]  }
 0x340   :  { %4894 = vmatprep.subr.bf16.mxu1 %v5432_v6  ;;  %v5458_v6 = vld [vmem:[#allocation3 + $0x750] sm:$0xff]  }
 0x341   :  { %v4702_v41 = vpop.f32.mrb[4].mxu1 }
 0x342   :  { %v4703_v29 = vpop.f32.mrb[5].mxu1 }
 0x343   :  { %v4704_v30 = vadd.f32 %v4703_v29, %v4702_v41  ;;  %v4705_v58 = vpop.f32.mrb[6].mxu1  ;;  %4895 = vmatpush3.bf16.msra.mxu1 %v5433_v31  ;;  %v5462_v31 = vld [vmem:[#allocation3 + $0x760] sm:$0xff]   ;;  %v5464_v29 = vld [vmem:[#allocation3 + $0x768] sm:$0xff]  }
 0x344   :  { %v4706_v49 = vpop.f32.mrb[7].mxu1  ;;  %4896 = vmatprep.subr.bf16.mxu1 %v5434_v40  ;;  %v5463_v40 = vld [vmem:[#allocation3 + $0x720] sm:$0xff]  }
 0x345   :  { %v3560_v17 = vadd.f32 %v4704_v30, %v3520_v42 }
 0x347   :  { %4897 = vmatpush3.bf16.msra.mxu1 %v5435_v23  ;;  %v5465_v23 = vld [vmem:[#allocation3 + $0x728] sm:$0xff]  }
 0x348   :  { %4898 = vmatprep.subr.bf16.mxu1 %v5436_v51 }
 0x34b   :  { %4899 = vmatpush3.bf16.msra.mxu1 %v5437_v59  ;;  %v5073_v59 = vadd.f32 %v6139_v19, %v555_v20 }
 0x34c   :  { %4928 = vmatprep.subr.bf16.mxu1 %v5438_v35  ;;  %v5468_v35 = vld [vmem:[#allocation3 + $0x778] sm:$0xff]  }
 0x34e   :  { %3918 = vmatmul.mubr.bf16.vlgmr.msra.gmra.mrb[32].mxu1 %v4652_v33  ;;  %v1154_v33 = vmax.f32 %v5073_v59, 0.0 }
 0x34f   :  { %4929 = vmatpush3.bf16.msra.mxu1 %v5439_v34  ;;  %3997 = vmatprep.mubr.bf16.mxu1 %v4657_v48  ;;  %v5469_v34 = vld [vmem:[#allocation3 + $0x738] sm:$0xff]  }
 0x350   :  { %4930 = vmatprep.subr.bf16.mxu1 %v5440_v47  ;;  %v4660_v47 = vpack.c.bf16 %v1154_v33, %v1154_v33 }
 0x353   :  { %4931 = vmatpush3.bf16.msra.mxu1 %v5441_v43 }
 0x354   :  { %4932 = vmatprep.subr.bf16.mxu1 %v5442_v50 }
 0x357   :  { %4933 = vmatpush3.bf16.msra.mxu1 %v5443_v63 }
 0x358   :  { %4934 = vmatprep.subr.bf16.mxu1 %v5444_v52 }
 0x35b   :  { %v4878_v61 = vpop.f32.mrb[36].mxu0  ;;  %4935 = vmatpush3.bf16.msra.mxu1 %v5445_v54 }
 0x35c   :  { %v4879_v8 = vpop.f32.mrb[37].mxu0  ;;  %4936 = vmatprep.subr.bf16.mxu1 %v5446_v56 }
 0x35d   :  { %v6194_v13 = vadd.f32 %v4879_v8, %v4878_v61  ;;  %v4881_v14 = vpop.f32.mrb[38].mxu0 }
 0x35e   :  { %v4882_v15 = vpop.f32.mrb[39].mxu0 }
 0x35f   :  { %4937 = vmatpush3.bf16.msra.mxu1 %v5447_v2 }
 0x360   :  { %4938 = vmatprep.subr.bf16.mxu1 %v5448_v12 }
 0x361   :  { %v4724_v24 = vpop.f32.mrb[8].mxu1 }
 0x362   :  { %v4725_v25 = vpop.f32.mrb[9].mxu1 }
 0x363   :  { %v4726_v10 = vadd.f32 %v4725_v25, %v4724_v24  ;;  %v4727_v37 = vpop.f32.mrb[10].mxu1  ;;  %4939 = vmatpush3.bf16.msra.mxu1 %v5449_v16 }
 0x364   :  { %v4728_v26 = vpop.f32.mrb[11].mxu1  ;;  %4940 = vmatprep.subr.bf16.mxu1 %v5450_v22 }
 0x365   :  { %v3600_v27 = vadd.f32 %v4726_v10, %v3560_v17  ;;  %v5467_v17 = vld [vmem:[#allocation3 + $0x730] sm:$0xff]   ;;  %v5538_v26 = vmov 0.0  }
 0x367   :  { %4941 = vmatpush3.bf16.msra.mxu1 %v5451_v11 }
 0x368   :  { %4942 = vmatprep.subr.bf16.mxu1 %v5452_v36  ;;  %v5471_v36 = vld [vmem:[%s6254_s5 + $0x8] sm:$0xff]  }
 0x36b   :  { %4943 = vmatpush3.bf16.msra.mxu1 %v5453_v38  ;;  %v5474_v38 = vld [vmem:[%s6254_s5 + $0x20] sm:$0xff]  }
 0x36c   :  { %4972 = vmatprep.subr.bf16.mxu1 %v5454_v18 }
 0x36e   :  { %3998 = vmatmul.mubr.bf16.vlgmr.msra.gmra.mrb[36].mxu1 %v4656_v4 }
 0x36f   :  { %4973 = vmatpush3.bf16.msra.mxu1 %v5455_v21  ;;  %4077 = vmatprep.mubr.bf16.mxu1 %v4661_v0  ;;  %v5476_v0 = vld [vmem:[%s6254_s5 + $0x30] sm:$0xff]  }
 0x370   :  { %4974 = vmatprep.subr.bf16.mxu1 %v5456_v60 }
 0x373   :  { %4975 = vmatpush3.bf16.msra.mxu1 %v5457_v57 }
 0x374   :  { %4976 = vmatprep.subr.bf16.mxu1 %v5458_v6 }
 0x377   :  { %4977 = vmatpush3.bf16.msra.mxu1 %v5459_v1  ;;  %v5477_v1 = vld [vmem:[%s6254_s5 + $0x38] sm:$0xff]  }
 0x378   :  { %4978 = vmatprep.subr.bf16.mxu1 %v5460_v3 }
 0x37b   :  { %v4922_v9 = vpop.f32.mrb[40].mxu0  ;;  %4979 = vmatpush3.bf16.msra.mxu1 %v5461_v46 }
 0x37c   :  { %v4923_v41 = vpop.f32.mrb[41].mxu0  ;;  %4980 = vmatprep.subr.bf16.mxu1 %v5462_v31 }
 0x37d   :  { %v6198_v42 = vadd.f32 %v4923_v41, %v4922_v9  ;;  %v4925_v30 = vpop.f32.mrb[42].mxu0 }
 0x37e   :  { %v4926_v58 = vpop.f32.mrb[43].mxu0 }
 0x37f   :  { %4981 = vmatpush3.bf16.msra.mxu1 %v5463_v40 }
 0x380   :  { %4982 = vmatprep.subr.bf16.mxu1 %v5464_v29 }
 0x381   :  { %v4746_v44 = vpop.f32.mrb[12].mxu1 }
 0x382   :  { %v4747_v49 = vpop.f32.mrb[13].mxu1 }
 0x383   :  { %v4748_v51 = vadd.f32 %v4747_v49, %v4746_v44  ;;  %v4749_v55 = vpop.f32.mrb[14].mxu1  ;;  %4983 = vmatpush3.bf16.msra.mxu1 %v5465_v23 }
 0x384   :  { %v4750_v53 = vpop.f32.mrb[15].mxu1  ;;  %4984 = vmatprep.subr.bf16.mxu1 %v5466_v62 }
 0x385   :  { %v3640_v5 = vadd.f32 %v4748_v51, %v3600_v27  ;;  %v5473_v27 = vld [vmem:[%s6254_s5 + $0x18] sm:$0xff]  }
 0x387   :  { %4985 = vmatpush3.bf16.msra.mxu1 %v5467_v17 }
 0x388   :  { %4986 = vmatprep.subr.bf16.mxu1 %v5468_v35 }
 0x38b   :  { %4987 = vmatpush3.bf16.msra.mxu1 %v5469_v34 }
 0x38c   :  { %5025 = vmatprep.subr.bf16.mxu1 %v5538_v26 }
 0x38e   :  { %4078 = vmatmul.mubr.bf16.vlgmr.msra.gmra.mrb[40].mxu1 %v4660_v47 }
 0x38f   :  { %5026 = vmatpush3.bf16.msra.mxu1 %v5470_v28  ;;  %5041 = vmatprep.mubr.msk.bf16.mxu1 %vm5539_vm9, %v5538_v26 }
 0x390   :  { %5027 = vmatprep.subr.bf16.mxu1 %v5538_v26 }
 0x393   :  { %5028 = vmatpush3.bf16.msra.mxu1 %v5471_v36 }
 0x394   :  { %5029 = vmatprep.subr.bf16.mxu1 %v5538_v26 }
 0x397   :  { %5030 = vmatpush3.bf16.msra.mxu1 %v5472_v7 }
 0x398   :  { %5031 = vmatprep.subr.bf16.mxu1 %v5538_v26 }
 0x39b   :  { %v4966_v48 = vpop.f32.mrb[44].mxu0  ;;  %5032 = vmatpush3.bf16.msra.mxu1 %v5473_v27 }
 0x39c   :  { %v4967_v43 = vpop.f32.mrb[45].mxu0  ;;  %5033 = vmatprep.subr.bf16.mxu1 %v5538_v26 }
 0x39d   :  { %v6201_v50 = vadd.f32 %v4967_v43, %v4966_v48  ;;  %v4969_v63 = vpop.f32.mrb[46].mxu0 }
 0x39e   :  { %v4970_v52 = vpop.f32.mrb[47].mxu0 }
 0x39f   :  { %5034 = vmatpush3.bf16.msra.mxu1 %v5474_v38 }
 0x3a0   :  { %5035 = vmatprep.subr.bf16.mxu1 %v5538_v26 }
 0x3a1   :  { %v4768_v54 = vpop.f32.mrb[16].mxu1 }
 0x3a2   :  { %v4769_v56 = vpop.f32.mrb[17].mxu1 }
 0x3a3   :  { %v4770_v19 = vadd.f32 %v4769_v56, %v4768_v54  ;;  %v4771_v61 = vpop.f32.mrb[18].mxu1  ;;  %5036 = vmatpush3.bf16.msra.mxu1 %v5475_v45 }
 0x3a4   :  { %v4772_v2 = vpop.f32.mrb[19].mxu1  ;;  %5037 = vmatprep.subr.bf16.mxu1 %v5538_v26 }
 0x3a5   :  { %v3680_v8 = vadd.f32 %v4770_v19, %v3640_v5 }
 0x3a7   :  { %5038 = vmatpush3.bf16.msra.mxu1 %v5476_v0 }
 0x3a8   :  { %5039 = vmatprep.subr.bf16.mxu1 %v5538_v26 }
 0x3ab   :  { %5040 = vmatpush3.bf16.msra.mxu1 %v5477_v1 }
 0x3bb   :  { %v5010_v12 = vpop.f32.mrb[48].mxu0 }
 0x3bc   :  { %v5011_v14 = vpop.f32.mrb[49].mxu0 }
 0x3bd   :  { %v6203_v15 = vadd.f32 %v5011_v14, %v5010_v12  ;;  %v5013_v16 = vpop.f32.mrb[50].mxu0 }
 0x3be   :  { %v5014_v22 = vpop.f32.mrb[51].mxu0 }
 0x3c1   :  { %v4790_v24 = vpop.f32.mrb[20].mxu1 }
 0x3c2   :  { %v4791_v25 = vpop.f32.mrb[21].mxu1 }
 0x3c3   :  { %v4792_v10 = vadd.f32 %v4791_v25, %v4790_v24  ;;  %v4793_v37 = vpop.f32.mrb[22].mxu1 }
 0x3c4   :  { %v4794_v11 = vpop.f32.mrb[23].mxu1 }
 0x3c5   :  { %v3720_v20 = vadd.f32 %v4792_v10, %v3680_v8 }
 0x3e1   :  { %v4812_v18 = vpop.f32.mrb[24].mxu1 }
 0x3e2   :  { %v4813_v39 = vpop.f32.mrb[25].mxu1 }
 0x3e3   :  { %v4814_v21 = vadd.f32 %v4813_v39, %v4812_v18  ;;  %v4815_v4 = vpop.f32.mrb[26].mxu1 }
 0x3e4   :  { %v4816_v60 = vpop.f32.mrb[27].mxu1 }
 0x3e5   :  { %v3760_v57 = vadd.f32 %v4814_v21, %v3720_v20 }
 0x3e7   :  { %v3800_v6 = vadd.f32 %v6187_v32, %v3760_v57 }
 0x401   :  { %v4856_v3 = vpop.f32.mrb[28].mxu1 }
 0x402   :  { %v4857_v46 = vpop.f32.mrb[29].mxu1 }
 0x403   :  { %v4858_v31 = vadd.f32 %v4857_v46, %v4856_v3  ;;  %v4859_v9 = vpop.f32.mrb[30].mxu1 }
 0x404   :  { %v4860_v40 = vpop.f32.mrb[31].mxu1 }
 0x405   :  { %v3840_v41 = vadd.f32 %v4858_v31, %v3800_v6 }
 0x407   :  { %v3880_v29 = vadd.f32 %v6194_v13, %v3840_v41 }
 0x421   :  { %v4900_v30 = vpop.f32.mrb[32].mxu1 }
 0x422   :  { %v4901_v58 = vpop.f32.mrb[33].mxu1 }
 0x423   :  { %v4902_v23 = vadd.f32 %v4901_v58, %v4900_v30  ;;  %v4903_v32 = vpop.f32.mrb[34].mxu1 }
 0x424   :  { %v4904_v62 = vpop.f32.mrb[35].mxu1 }
 0x425   :  { %v3920_v44 = vadd.f32 %v4902_v23, %v3880_v29 }
 0x427   :  { %v3960_v49 = vadd.f32 %v6198_v42, %v3920_v44  ;;  %v4607_v42 = vld [vmem:[%s6255_s6] ss:$0 sm:$0xff] }
 0x441   :  { %v4944_v51 = vpop.f32.mrb[36].mxu1 }
 0x442   :  { %v4945_v55 = vpop.f32.mrb[37].mxu1 }
 0x443   :  { %v4946_v17 = vadd.f32 %v4945_v55, %v4944_v51  ;;  %v4947_v59 = vpop.f32.mrb[38].mxu1 }
 0x444   :  { %v4948_v53 = vpop.f32.mrb[39].mxu1 }
 0x445   :  { %v4000_v35 = vadd.f32 %v4946_v17, %v3960_v49 }
 0x447   :  { %v4040_v5 = vadd.f32 %v6201_v50, %v4000_v35 }
 0x461   :  { %v4988_v34 = vpop.f32.mrb[40].mxu1 }
 0x462   :  { %v4989_v33 = vpop.f32.mrb[41].mxu1 }
 0x463   :  { %v4990_v47 = vadd.f32 %v4989_v33, %v4988_v34  ;;  %v4991_v13 = vpop.f32.mrb[42].mxu1 }
 0x464   :  { %v4992_v48 = vpop.f32.mrb[43].mxu1 }
 0x465   :  { %v4080_v43 = vadd.f32 %v4990_v47, %v4040_v5 }
 0x467   :  { %v4120_v63 = vadd.f32 %v6203_v15, %v4080_v43 }
 0x469   :  { %v4125_v52 = vmax.f32 %v4120_v63, 0.0 }
 0x46b   :  { %v4126_v54 = vpack.c.bf16 %v4125_v52, %v4125_v52 }
 0x46d   :  { %5042 = vmatmul.mubr.bf16.vlgmr.msra.gmra.mrb[44].mxu1 %v4126_v54 }
 0x540   :  { %v4232_v56 = vpop.f32.mrb[44].mxu1 }
 0x541   :  { %v4233_v19 = vadd.f32 %v4607_v42, %v4232_v56  ;;  %v5043_v50 = vpop.f32.mrb[45].mxu1 }
 0x542   :  { %v4235_v61 = vpop.f32.mrb[46].mxu1 }
 0x543   :  { %4238 = vst [vmem:[#allocation6] sm:$0xff] %v4233_v19  ;;  %v5044_v2 = vpop.f32.mrb[47].mxu1 }
 0x544   :  { %5511 = shalt.err (!%p5508_p12)
}
 0x545   :  { %s5512_s6 = scalar_lea.hbm %s6256_s7, 128 }
 0x546   :  { %p5513_p13 = scmp.ne.s32.totalorder %s6256_s7, %s5512_s6  ;;  %p5516_p0 = scmp.lt.u32.totalorder %s5512_s6, %s6256_s7 }
 0x548   :  { %p5518_p1 = pnand %p5516_p0, %p5513_p13 }
 0x54a   :  { %5521 = shalt.err (!%p5518_p1)
}
 0x54b   :  { %4248 = dma.vmem_to_hbm [thread:$0]  %s4246_s24, 128, %s6256_s7, [#allocation5]  }
 0x54c   :  { %5524 = dma.done.wait [#allocation5], 128  }
 0x54d   :  { %5525 = vsyncadd [#allocation5], 4294967168 }
 0x54e   :  { %4252 = vsyncpa [#allocation4], 1 }
 0x54f   :  { %4253 = vsyncpa [#allocation5], 1 }

</bundles_post_ra>
